<compile_context>
chip_gen: v7x
topology: tpu7x:2x2x1
jax: 0.10.0
libtpu: 0.0.40
codegen_flags: <defaults>
</compile_context>

<pallas_src>
import functools
import math

import jax
import jax.numpy as jnp
from jax import lax
from jax.experimental import pallas as pl
from jax.experimental.pallas import tpu as pltpu

W1 = 100        # hidden width from the PyTorch script
W1_PAD = 128    # MXU-friendly padded hidden width (zero-padded: exact, ReLU(0)=0)
TILE_B = 2048   # batch tile (lanes); balanced / 128-aligned tiles derived per call


def _round_up(x, m):
    return ((x + m - 1) // m) * m


def _psk_kernel(
    x_ref,       # (bits_dim, TB) bf16   bits in {-1, +1}, batch in lanes
    noise_ref,   # (2*np,    TB) f32     AWGN, [re-rows ; im-rows]
    wk_ref,      # (2*128 + p3e + p3d, 128) bf16  [w2e_T ; w2d_T ; w3e_T(pad) ; w3d_T(pad)]
    w1e_ref,     # (128, bits_dim) bf16
    w1d_ref,     # (128, 2*np)     bf16
    bias_ref,    # (128, 8) f32    cols: b1e,b2e,b3e,b1d,b2d,b3d,0,0
    out_ref,     # (2*np + bits_dim, TB) f32 : [sym_re ; sym_im ; bits_out]
    *, np_, bps,
):
    f32 = jnp.float32
    bf16 = jnp.bfloat16
    HP = W1_PAD
    two_np = 2 * np_
    bits_dim = np_ * bps
    p3e = _round_up(two_np, 8)

    x = x_ref[...]                      # (bits_dim, TB)
    biases = bias_ref[...]              # (128, 8)

    w1e_t = w1e_ref[...]                                            # (128, bits_dim)
    w1d_t = w1d_ref[...]                                            # (128, 2*np)
    w2e_t = wk_ref[0:HP, :]                                         # (128, 128)
    w2d_t = wk_ref[HP:2 * HP, :]                                    # (128, 128)
    w3e_t = wk_ref[2 * HP:2 * HP + two_np, :]                       # (2*np, 128)
    w3d_t = wk_ref[2 * HP + p3e:2 * HP + p3e + bits_dim, :]         # (bits_dim, 128)

    # ----- encoder MLP (weights-stationary LHS, batch on the MXU N dim) -----
    h = jnp.dot(w1e_t, x, preferred_element_type=f32) + biases[:, 0:1]
    h = jnp.maximum(h, 0.0)
    h = jnp.dot(w2e_t, h.astype(bf16), preferred_element_type=f32) + biases[:, 1:2]
    h = jnp.maximum(h, 0.0)
    z = jnp.dot(w3e_t, h.astype(bf16), preferred_element_type=f32) + biases[:two_np, 2:3]

    # ----- channel: tanh(|z|) * exp(i*angle(z)) + sigma * CN(0,1)  (f32, EUP ops) -----
    re = z[:np_, :]
    im = z[np_:, :]
    rr = re * re + im * im
    inv_r = lax.rsqrt(rr + 1e-30)
    # s = tanh(r)/r; evaluates to 0 (not the analytic limit 1) at r == 0, which is
    # exact here because z == 0 there, so s*z == 0 either way. Do NOT "fix" to a divide.
    s = jnp.tanh(rr * inv_r) * inv_r
    ch = jnp.concatenate([s * re, s * im], axis=0) + noise_ref[...]   # (2*np, TB)

    # ----- decoder MLP (first layer fused over [re ; im] rows) -----
    hd = jnp.dot(w1d_t, ch.astype(bf16), preferred_element_type=f32) + biases[:, 3:4]
    hd = jnp.maximum(hd, 0.0)
    hd = jnp.dot(w2d_t, hd.astype(bf16), preferred_element_type=f32) + biases[:, 4:5]
    hd = jnp.maximum(hd, 0.0)
    bits_out = (jnp.dot(w3d_t, hd.astype(bf16), preferred_element_type=f32)
                + biases[:bits_dim, 5:6])

    # lane-dense output slab (batch fills the 128 lanes -> unmasked stores)
    out_ref[...] = jnp.concatenate([ch, bits_out], axis=0)


def make_params(key, np_, bps):
    """Deterministic params; uniform(-1/sqrt(fan_in), 1/sqrt(fan_in)) like nn.Linear.
    De-interleaves (re, im) weight columns/rows, zero-pads W1 100->128 (exact),
    transposes everything to the batch-in-lanes layout and packs operands."""
    bits_dim = np_ * bps
    two_np = 2 * np_
    HP = W1_PAD

    def linear(k, fan_in, fan_out):
        kw, kb = jax.random.split(k)
        bound = 1.0 / math.sqrt(float(fan_in))
        w = jax.random.uniform(kw, (fan_in, fan_out), jnp.float32, -bound, bound)
        b = jax.random.uniform(kb, (fan_out,), jnp.float32, -bound, bound)
        return w, b

    ks = jax.random.split(key, 6)
    w1e, b1e = linear(ks[0], bits_dim, W1)      # encoder: bits_dim -> W1 -> W1 -> 2*np
    w2e, b2e = linear(ks[1], W1, W1)
    w3e, b3e = linear(ks[2], W1, two_np)
    w1d, b1d = linear(ks[3], two_np, W1)        # decoder: 2*np -> W1 -> W1 -> bits_dim
    w2d, b2d = linear(ks[4], W1, W1)
    w3d, b3d = linear(ks[5], W1, bits_dim)

    # de-interleave interleaved (re, im) columns/rows -> [re-block | im-block]
    w3e_p = jnp.concatenate([w3e[:, 0::2], w3e[:, 1::2]], axis=1)
    b3e_p = jnp.concatenate([b3e[0::2], b3e[1::2]], axis=0)
    w1d_p = jnp.concatenate([w1d[0::2, :], w1d[1::2, :]], axis=0)

    def pad_to(a, rows, cols):
        return jnp.pad(a, ((0, rows - a.shape[0]), (0, cols - a.shape[1])))

    bf16 = jnp.bfloat16
    # transposed (batch-in-lanes) weights
    w1e_t = pad_to(w1e, bits_dim, HP).T.astype(bf16)       # (HP, bits_dim)
    w2e_t = pad_to(w2e, HP, HP).T.astype(bf16)             # (HP, HP)
    w3e_t = pad_to(w3e_p, HP, two_np).T.astype(bf16)       # (two_np, HP)
    w1d_t = pad_to(w1d_p, two_np, HP).T.astype(bf16)       # (HP, two_np)
    w2d_t = pad_to(w2d, HP, HP).T.astype(bf16)             # (HP, HP)
    w3d_t = pad_to(w3d, HP, bits_dim).T.astype(bf16)       # (bits_dim, HP)

    p3e = _round_up(two_np, 8)
    p3d = _round_up(bits_dim, 8)
    wk = jnp.concatenate(
        [w2e_t, w2d_t,
         jnp.pad(w3e_t, ((0, p3e - two_np), (0, 0))),
         jnp.pad(w3d_t, ((0, p3d - bits_dim), (0, 0)))],
        axis=0)                                            # (2*HP + p3e + p3d, HP)

    bias = jnp.zeros((HP, 8), jnp.float32)
    bias = bias.at[:W1, 0].set(b1e).at[:W1, 1].set(b2e)
    bias = bias.at[:two_np, 2].set(b3e_p)
    bias = bias.at[:W1, 3].set(b1d).at[:W1, 4].set(b2d)
    bias = bias.at[:bits_dim, 5].set(b3d)

    return dict(wk=wk, w1e_t=w1e_t, w1d_t=w1d_t, bias=bias)


@functools.partial(jax.jit, static_argnames=("np_", "bps", "sigma"))
def psk_constellation(bits_in, noise_key, params, *, np_, bps, sigma):
    """bits_in: (n_syms, np_, bps) f32 in {-1, +1}; noise_key: jax PRNG key.
    Returns (symbols complex64 (n_syms, np_), bits_out f32 (n_syms, np_, bps))."""
    B = bits_in.shape[0]
    bits_dim = np_ * bps
    two_np = 2 * np_
    out_dim = two_np + bits_dim

    # balanced, 128-aligned batch tiles; >=2 tiles for large B (v7x has 2 TensorCores)
    num_tiles = max(1, -(-B // TILE_B))
    if num_tiles == 1 and B >= 1024:
        num_tiles = 2
    tile_b = _round_up(-(-B // num_tiles), 128)
    b_pad = num_tiles * tile_b

    # batch-in-lanes: features on sublanes, batch on lanes
    x_t = bits_in.reshape(B, bits_dim).T.astype(jnp.bfloat16)   # {-1,+1} exact in bf16
    x_t = jnp.pad(x_t, ((0, 0), (0, b_pad - B)))

    # torch.randn_like on a complex tensor draws re/im each with variance 1/2.
    nscale = float(sigma) / math.sqrt(2.0)
    noise = jax.random.normal(noise_key, (two_np, B), jnp.float32) * nscale
    noise = jnp.pad(noise, ((0, 0), (0, b_pad - B)))

    wk, w1e_t, w1d_t, bias = params["wk"], params["w1e_t"], params["w1d_t"], params["bias"]

    def bmap(i):       # batch-tiled arrays (lane axis)
        return (0, i)

    def wmap(i):       # weights/biases stay resident in VMEM
        return (0, 0)

    in_specs = [
        pl.BlockSpec((bits_dim, tile_b), bmap),
        pl.BlockSpec((two_np, tile_b), bmap),
        pl.BlockSpec(wk.shape, wmap),
        pl.BlockSpec(w1e_t.shape, wmap),
        pl.BlockSpec(w1d_t.shape, wmap),
        pl.BlockSpec(bias.shape, wmap),
    ]
    out_spec = pl.BlockSpec((out_dim, tile_b), bmap)

    # vmem limit from actual per-tile footprint (+ headroom), capped for v7x's 64 MiB
    weight_bytes = sum(int(a.size) * a.dtype.itemsize for a in (wk, w1e_t, w1d_t, bias))
    io_bytes = 2 * tile_b * (bits_dim * 2 + two_np * 4 + out_dim * 4)   # double-buffered
    act_bytes = 12 * W1_PAD * tile_b * 4                                # live activations
    vmem_limit = int(min(64 << 20,
                         max(io_bytes + 2 * weight_bytes + act_bytes + (4 << 20),
                             16 << 20)))

    slab = pl.pallas_call(
        functools.partial(_psk_kernel, np_=np_, bps=bps),
        out_shape=jax.ShapeDtypeStruct((out_dim, b_pad), jnp.float32),
        grid_spec=pltpu.PrefetchScalarGridSpec(
            num_scalar_prefetch=0,
            grid=(num_tiles,),
            in_specs=in_specs,
            out_specs=out_spec,
        ),
        compiler_params=pltpu.CompilerParams(
            dimension_semantics=("parallel",),
            vmem_limit_bytes=vmem_limit,
        ),
    )(x_t, noise, wk, w1e_t, w1d_t, bias)

    sym_re = slab[:np_, :B]                              # (np_, B)
    sym_im = slab[np_:two_np, :B]
    symbols = (sym_re + 1j * sym_im).T                   # (B, np_) complex64
    bits_out = slab[two_np:, :B].T.reshape(B, np_, bps)  # (B, np_, bps)
    return symbols, bits_out


if __name__ == "__main__":
    # small, deterministic config consistent with the module
    bps = 2
    np_ = 4
    EsNodB = 10.0
    sigma = float(10 ** (-0.5 * EsNodB / 10))
    n_syms = 300   # exercises non-multiple-of-128 batch + padding path

    key = jax.random.PRNGKey(0)
    k_params, k_bits, k_noise = jax.random.split(key, 3)

    params = make_params(k_params, np_, bps)
    # bits in {-1, +1}, mirroring torch.sign(torch.rand(...) - 0.5)
    bits_in = jnp.sign(
        jax.random.uniform(k_bits, (n_syms, np_, bps), jnp.float32) - 0.5
    )

    symbols, bits_out = psk_constellation(
        bits_in, k_noise, params, np_=np_, bps=bps, sigma=sigma
    )
    jax.block_until_ready((symbols, bits_out))

    assert symbols.shape == (n_syms, np_) and symbols.dtype == jnp.complex64
    assert bits_out.shape == (n_syms, np_, bps)
    assert bool(jnp.all(jnp.isfinite(bits_out)))
    assert bool(jnp.all(jnp.isfinite(jnp.abs(symbols))))
    print("KERNEL_OK")
</pallas_src>

<mosaic_0001>
module attributes {stable_mosaic.version = 11 : i64} {
  func.func @_psk_kernel(%arg0: i32, %arg1: memref<8x384xbf16, #tpu.memory_space<vmem>>, %arg2: memref<8x384xf32, #tpu.memory_space<vmem>>, %arg3: memref<272x128xbf16, #tpu.memory_space<vmem>>, %arg4: memref<128x8xbf16, #tpu.memory_space<vmem>>, %arg5: memref<128x8xbf16, #tpu.memory_space<vmem>>, %arg6: memref<128x8xf32, #tpu.memory_space<vmem>>, %arg7: memref<16x384xf32, #tpu.memory_space<vmem>>) attributes {dimension_semantics = [#tpu.dimension_semantics<parallel>], iteration_bounds = array<i64: 1>, scalar_prefetch = 0 : i64, scratch_operands = 0 : i64, tpu.core_type = #tpu.core_type<tc>, window_params = [{transform_indices = @transform_0, window_bounds = array<i64: 8, 384>}, {transform_indices = @transform_1, window_bounds = array<i64: 8, 384>}, {pipeline_mode = #tpu.pipeline_mode<synchronous>, transform_indices = @transform_2, window_bounds = array<i64: 272, 128>}, {pipeline_mode = #tpu.pipeline_mode<synchronous>, transform_indices = @transform_3, window_bounds = array<i64: 128, 8>}, {pipeline_mode = #tpu.pipeline_mode<synchronous>, transform_indices = @transform_4, window_bounds = array<i64: 128, 8>}, {pipeline_mode = #tpu.pipeline_mode<synchronous>, transform_indices = @transform_5, window_bounds = array<i64: 128, 8>}, {transform_indices = @transform_6, window_bounds = array<i64: 16, 384>}]} {
    %c0 = arith.constant 0 : index
    %c0_0 = arith.constant 0 : index
    %0 = vector.load %arg1[%c0, %c0_0] : memref<8x384xbf16, #tpu.memory_space<vmem>>, vector<8x384xbf16>
    %c0_1 = arith.constant 0 : index
    %c0_2 = arith.constant 0 : index
    %1 = vector.load %arg6[%c0_1, %c0_2] : memref<128x8xf32, #tpu.memory_space<vmem>>, vector<128x8xf32>
    %c0_3 = arith.constant 0 : index
    %c0_4 = arith.constant 0 : index
    %2 = vector.load %arg4[%c0_3, %c0_4] : memref<128x8xbf16, #tpu.memory_space<vmem>>, vector<128x8xbf16>
    %c0_5 = arith.constant 0 : index
    %c0_6 = arith.constant 0 : index
    %3 = vector.load %arg5[%c0_5, %c0_6] : memref<128x8xbf16, #tpu.memory_space<vmem>>, vector<128x8xbf16>
    %c0_7 = arith.constant 0 : index
    %c0_8 = arith.constant 0 : index
    %4 = vector.load %arg3[%c0_7, %c0_8] : memref<272x128xbf16, #tpu.memory_space<vmem>>, vector<128x128xbf16>
    %c128 = arith.constant 128 : index
    %c0_9 = arith.constant 0 : index
    %5 = vector.load %arg3[%c128, %c0_9] : memref<272x128xbf16, #tpu.memory_space<vmem>>, vector<128x128xbf16>
    %c256 = arith.constant 256 : index
    %c0_10 = arith.constant 0 : index
    %6 = vector.load %arg3[%c256, %c0_10] : memref<272x128xbf16, #tpu.memory_space<vmem>>, vector<8x128xbf16>
    %c264 = arith.constant 264 : index
    %c0_11 = arith.constant 0 : index
    %7 = vector.load %arg3[%c264, %c0_11] : memref<272x128xbf16, #tpu.memory_space<vmem>>, vector<8x128xbf16>
    %cst = arith.constant dense<0.000000e+00> : vector<128x384xf32>
    %8 = tpu.matmul %2, %0, %cst {dimension_numbers = #tpu.dot_dimension_numbers<[1], [0], [0], [1], [0, 0, 1, 1], [], []>} : vector<128x8xbf16>, vector<8x384xbf16>, vector<128x384xf32> -> vector<128x384xf32>
    %9 = vector.extract_strided_slice %1 {offsets = [0, 0], sizes = [128, 1], strides = [1, 1]} : vector<128x8xf32> to vector<128x1xf32>
    %10 = vector.broadcast %9 : vector<128x1xf32> to vector<128x384xf32>
    %11 = arith.addf %8, %10 : vector<128x384xf32>
    %cst_12 = arith.constant 0.000000e+00 : f32
    %12 = vector.broadcast %cst_12 : f32 to vector<128x384xf32>
    %13 = arith.maximumf %11, %12 : vector<128x384xf32>
    %14 = arith.truncf %13 : vector<128x384xf32> to vector<128x384xbf16>
    %cst_13 = arith.constant dense<0.000000e+00> : vector<128x384xf32>
    %15 = tpu.matmul %4, %14, %cst_13 {dimension_numbers = #tpu.dot_dimension_numbers<[1], [0], [0], [1], [0, 0, 1, 1], [], []>} : vector<128x128xbf16>, vector<128x384xbf16>, vector<128x384xf32> -> vector<128x384xf32>
    %16 = vector.extract_strided_slice %1 {offsets = [0, 1], sizes = [128, 1], strides = [1, 1]} : vector<128x8xf32> to vector<128x1xf32>
    %17 = vector.broadcast %16 : vector<128x1xf32> to vector<128x384xf32>
    %18 = arith.addf %15, %17 : vector<128x384xf32>
    %cst_14 = arith.constant 0.000000e+00 : f32
    %19 = vector.broadcast %cst_14 : f32 to vector<128x384xf32>
    %20 = arith.maximumf %18, %19 : vector<128x384xf32>
    %21 = arith.truncf %20 : vector<128x384xf32> to vector<128x384xbf16>
    %cst_15 = arith.constant dense<0.000000e+00> : vector<8x384xf32>
    %22 = tpu.matmul %6, %21, %cst_15 {dimension_numbers = #tpu.dot_dimension_numbers<[1], [0], [0], [1], [0, 0, 1, 1], [], []>} : vector<8x128xbf16>, vector<128x384xbf16>, vector<8x384xf32> -> vector<8x384xf32>
    %23 = vector.extract_strided_slice %1 {offsets = [0, 2], sizes = [8, 1], strides = [1, 1]} : vector<128x8xf32> to vector<8x1xf32>
    %24 = vector.broadcast %23 : vector<8x1xf32> to vector<8x384xf32>
    %25 = arith.addf %22, %24 : vector<8x384xf32>
    %26 = vector.extract_strided_slice %25 {offsets = [0, 0], sizes = [4, 384], strides = [1, 1]} : vector<8x384xf32> to vector<4x384xf32>
    %27 = vector.extract_strided_slice %25 {offsets = [4, 0], sizes = [4, 384], strides = [1, 1]} : vector<8x384xf32> to vector<4x384xf32>
    %28 = arith.mulf %26, %26 : vector<4x384xf32>
    %29 = arith.mulf %27, %27 : vector<4x384xf32>
    %30 = arith.addf %28, %29 : vector<4x384xf32>
    %cst_16 = arith.constant 1.000000e-30 : f32
    %31 = vector.broadcast %cst_16 : f32 to vector<4x384xf32>
    %32 = arith.addf %30, %31 : vector<4x384xf32>
    %33 = math.rsqrt %32 : vector<4x384xf32>
    %34 = arith.mulf %30, %33 : vector<4x384xf32>
    %35 = math.tanh %34 : vector<4x384xf32>
    %36 = arith.mulf %35, %33 : vector<4x384xf32>
    %37 = arith.mulf %36, %26 : vector<4x384xf32>
    %38 = arith.mulf %36, %27 : vector<4x384xf32>
    %39 = tpu.concatenate %37, %38 in 0 : vector<4x384xf32>, vector<4x384xf32> -> vector<8x384xf32>
    %c0_17 = arith.constant 0 : index
    %c0_18 = arith.constant 0 : index
    %40 = vector.load %arg2[%c0_17, %c0_18] : memref<8x384xf32, #tpu.memory_space<vmem>>, vector<8x384xf32>
    %41 = arith.addf %39, %40 : vector<8x384xf32>
    %42 = arith.truncf %41 : vector<8x384xf32> to vector<8x384xbf16>
    %cst_19 = arith.constant dense<0.000000e+00> : vector<128x384xf32>
    %43 = tpu.matmul %3, %42, %cst_19 {dimension_numbers = #tpu.dot_dimension_numbers<[1], [0], [0], [1], [0, 0, 1, 1], [], []>} : vector<128x8xbf16>, vector<8x384xbf16>, vector<128x384xf32> -> vector<128x384xf32>
    %44 = vector.extract_strided_slice %1 {offsets = [0, 3], sizes = [128, 1], strides = [1, 1]} : vector<128x8xf32> to vector<128x1xf32>
    %45 = vector.broadcast %44 : vector<128x1xf32> to vector<128x384xf32>
    %46 = arith.addf %43, %45 : vector<128x384xf32>
    %cst_20 = arith.constant 0.000000e+00 : f32
    %47 = vector.broadcast %cst_20 : f32 to vector<128x384xf32>
    %48 = arith.maximumf %46, %47 : vector<128x384xf32>
    %49 = arith.truncf %48 : vector<128x384xf32> to vector<128x384xbf16>
    %cst_21 = arith.constant dense<0.000000e+00> : vector<128x384xf32>
    %50 = tpu.matmul %5, %49, %cst_21 {dimension_numbers = #tpu.dot_dimension_numbers<[1], [0], [0], [1], [0, 0, 1, 1], [], []>} : vector<128x128xbf16>, vector<128x384xbf16>, vector<128x384xf32> -> vector<128x384xf32>
    %51 = vector.extract_strided_slice %1 {offsets = [0, 4], sizes = [128, 1], strides = [1, 1]} : vector<128x8xf32> to vector<128x1xf32>
    %52 = vector.broadcast %51 : vector<128x1xf32> to vector<128x384xf32>
    %53 = arith.addf %50, %52 : vector<128x384xf32>
    %cst_22 = arith.constant 0.000000e+00 : f32
    %54 = vector.broadcast %cst_22 : f32 to vector<128x384xf32>
    %55 = arith.maximumf %53, %54 : vector<128x384xf32>
    %56 = arith.truncf %55 : vector<128x384xf32> to vector<128x384xbf16>
    %cst_23 = arith.constant dense<0.000000e+00> : vector<8x384xf32>
    %57 = tpu.matmul %7, %56, %cst_23 {dimension_numbers = #tpu.dot_dimension_numbers<[1], [0], [0], [1], [0, 0, 1, 1], [], []>} : vector<8x128xbf16>, vector<128x384xbf16>, vector<8x384xf32> -> vector<8x384xf32>
    %58 = vector.extract_strided_slice %1 {offsets = [0, 5], sizes = [8, 1], strides = [1, 1]} : vector<128x8xf32> to vector<8x1xf32>
    %59 = vector.broadcast %58 : vector<8x1xf32> to vector<8x384xf32>
    %60 = arith.addf %57, %59 : vector<8x384xf32>
    %61 = tpu.concatenate %41, %60 in 0 : vector<8x384xf32>, vector<8x384xf32> -> vector<16x384xf32>
    %c0_24 = arith.constant 0 : index
    %c0_25 = arith.constant 0 : index
    %62 = vector.load %arg7[%c0_24, %c0_25] : memref<16x384xf32, #tpu.memory_space<vmem>>, vector<16x384xf32>
    tpu.vector_store %arg7[%c0_24, %c0_25], %61 {strides = array<i32>} : memref<16x384xf32, #tpu.memory_space<vmem>>, vector<16x384xf32>,
    return
  }
  func.func @transform_0(%arg0: i32) -> (i32, i32) {
    %c0_i32 = arith.constant 0 : i32
    %c0_i32_0 = arith.constant 0 : i32
    return %c0_i32, %arg0 : i32, i32
  }
  func.func @transform_1(%arg0: i32) -> (i32, i32) {
    %c0_i32 = arith.constant 0 : i32
    %c0_i32_0 = arith.constant 0 : i32
    return %c0_i32, %arg0 : i32, i32
  }
  func.func @transform_2(%arg0: i32) -> (i32, i32) {
    %c0_i32 = arith.constant 0 : i32
    %c0_i32_0 = arith.constant 0 : i32
    %c0_i32_1 = arith.constant 0 : i32
    return %c0_i32, %c0_i32_0 : i32, i32
  }
  func.func @transform_3(%arg0: i32) -> (i32, i32) {
    %c0_i32 = arith.constant 0 : i32
    %c0_i32_0 = arith.constant 0 : i32
    %c0_i32_1 = arith.constant 0 : i32
    return %c0_i32, %c0_i32_0 : i32, i32
  }
  func.func @transform_4(%arg0: i32) -> (i32, i32) {
    %c0_i32 = arith.constant 0 : i32
    %c0_i32_0 = arith.constant 0 : i32
    %c0_i32_1 = arith.constant 0 : i32
    return %c0_i32, %c0_i32_0 : i32, i32
  }
  func.func @transform_5(%arg0: i32) -> (i32, i32) {
    %c0_i32 = arith.constant 0 : i32
    %c0_i32_0 = arith.constant 0 : i32
    %c0_i32_1 = arith.constant 0 : i32
    return %c0_i32, %c0_i32_0 : i32, i32
  }
  func.func @transform_6(%arg0: i32) -> (i32, i32) {
    %c0_i32 = arith.constant 0 : i32
    %c0_i32_0 = arith.constant 0 : i32
    return %c0_i32, %arg0 : i32, i32
  }
}

</mosaic_0001>

<bundles_post_ra>
// kernel: custom-call
= control target key start
LH: loop header
LB: loop body
LE: loop exit
PB: predicated region body
PF: predicated region fallthrough
CT: control target
= control target key end

     0   :  { %s126_s0 = inlined_call_operand.vmem [shape: f32[300,4], index: 0, kind: input, shape index: {}]   ;;  %s127_s1 = inlined_call_operand.vmem [shape: f32[300,4], index: 1, kind: input, shape index: {}]   ;;  %s128_s2 = inlined_call_operand.hbm [shape: c64[300,4], index: 2, kind: output, shape index: {}]  }
   0x1   :  { %s87_s11 = scalar_lea.hbm %s128_s2, 192 }
   0x2   :  { %4 = vsyncpa [#allocation0], 0  ;;  %s5_s14 = sshll.u32 %s126_s0, 4  ;;  %s6_s14 = int_to_ptr.vmem [resolvable:$true] %s5_s14 }
   0x3   :  { %s18_s15 = scalar_lea.vmem %s6_s14, 192  ;;  %p23_p1 = scmp.lt.s32.totalorder %s6_s14, %s6_s14 }
   0x4   :  { %p19_p0 = scmp.ne.s32.totalorder %s6_s14, %s18_s15  ;;  %p24_p2 = scmp.lt.s32.totalorder %s18_s15, %s18_s15 }
   0x6   :  { %p25_p3 = por %p24_p2, %p23_p1 }
   0x8   :  { %p26_p4 = pnand %p25_p3, %p19_p0 }
   0xa   :  { %29 = shalt.err (!%p26_p4)  }
   0xb   :  { %p31_p5 = scmp.ne.s32.totalorder %s128_s2, %s87_s11  ;;  %s32_s0 = scalar_lea.hbm %s128_s2, 384 }
   0xc   :  { %p33_p6 = scmp.lt.u32.totalorder %s32_s0, %s87_s11  ;;  %p34_p7 = scmp.lt.u32.totalorder %s87_s11, %s128_s2 }
   0xe   :  { %p35_p8 = por %p34_p7, %p33_p6 }
  0x10   :  { %p36_p9 = pnand %p35_p8, %p31_p5 }
  0x12   :  { %39 = shalt.err (!%p36_p9)  }
  0x13   :  { %8 = dma.vmem_to_hbm [thread:$0]  %s6_s14, 192, %s128_s2, [#allocation0] }
  0x14   :  { %65 = dma.done.wait [#allocation0], 192  }
  0x15   :  { %66 = vsyncadd [#allocation0], 4294967104 }
  0x16   :  { %10 = vsyncpa [#allocation0], 1 }
  0x17   :  { %11 = vsyncpa [#allocation1], 0  ;;  %s12_s28 = sshll.u32 %s127_s1, 4  ;;  %s13_s28 = int_to_ptr.vmem [resolvable:$true] %s12_s28 }
  0x18   :  { %s40_s29 = scalar_lea.vmem %s13_s28, 192  ;;  %p45_p11 = scmp.lt.s32.totalorder %s13_s28, %s13_s28 }
  0x19   :  { %p41_p10 = scmp.ne.s32.totalorder %s13_s28, %s40_s29  ;;  %p46_p12 = scmp.lt.s32.totalorder %s40_s29, %s40_s29 }
  0x1b   :  { %p47_p13 = por %p46_p12, %p45_p11 }
  0x1d   :  { %p48_p0 = pnand %p47_p13, %p41_p10 }
  0x1f   :  { %51 = shalt.err (!%p48_p0)  }
  0x20   :  { %p53_p1 = scmp.ne.s32.totalorder %s87_s11, %s32_s0  ;;  %p56_p2 = scmp.lt.u32.totalorder %s32_s0, %s32_s0 }
  0x22   :  { %p57_p3 = por %p56_p2, %p34_p7 }
  0x24   :  { %p59_p4 = por %p57_p3, %p33_p6 }
  0x26   :  { %p60_p5 = pnand %p59_p4, %p53_p1 }
  0x28   :  { %63 = shalt.err (!%p60_p5)  }
  0x29   :  { %15 = dma.vmem_to_hbm [thread:$0]  %s13_s28, 192, %s87_s11, [#allocation1] }
  0x2a   :  { %67 = dma.done.wait [#allocation1], 192  }
  0x2b   :  { %68 = vsyncadd [#allocation1], 4294967104 }
  0x2c   :  { %17 = vsyncpa [#allocation1], 1 }

// kernel: psk_constellation.1
= control target key start
LH: loop header
LB: loop body
LE: loop exit
PB: predicated region body
PF: predicated region fallthrough
CT: control target
= control target key end

     0   :  { %vm261_vm0 = vcmask 1043456   ;;  %v2366_v2 = vmov 0   ;;  %vm236_vm1 = vcmask 64512   ;;  %v2367_v43 = vmov 1   ;;  %s3259_s0 = inlined_call_operand.vmem [shape: bf16[8,384], index: 0, kind: input, shape index: {}]   ;;  %s3260_s3 = inlined_call_operand.vmem [shape: bf16[128,8], index: 3, kind: input, shape index: {}]   ;;  %s3261_s5 = inlined_call_operand.vmem [shape: f32[128,8], index: 5, kind: input, shape index: {}]   ;;  %s3262_s2 = inlined_call_operand.vmem [shape: bf16[272,128], index: 2, kind: input, shape index: {}]   ;;  %s3263_s4 = inlined_call_operand.vmem [shape: bf16[128,8], index: 4, kind: input, shape index: {}]   ;;  %s3264_s1 = inlined_call_operand.vmem [shape: f32[8,384], index: 1, kind: input, shape index: {}]   ;;  %s3265_s6 = inlined_call_operand.vmem [shape: f32[16,384], index: 6, kind: output, shape index: {}]  }
   0x1   :  { %v24_v0 = vld [vmem:[%s3259_s0] sm:$0xff]  ;;  %v2304_v1 = vld [vmem:[%s3259_s0 + $0x8] ss:$0 sps:$4 sm:$0xff]   ;;  %303 = vmatprep.mubr.bf16.mxu0 %v2366_v2  ;;  %2293 = vset.pattern.permute.xlu0 %v2366_v2  ;;  %v2308_v9 = vld [vmem:[%s3260_s3 + $0x10] sm:$0xff]   ;;  %vm2369_vm2 = vmmov 0  }
   0x2   :  { %v2015_v3 = vcombine.high %v24_v0, %v24_v0  ;;  %v2014_v4 = vcombine.low %v24_v0, %v24_v0  ;;  %v2306_v5 = vld [vmem:[%s3260_s3] sm:$0xff]   ;;  %2294 = vset.pattern.permute.xlu1 %v2366_v2  ;;  %2283 = vmatprep.subr.msk.bf16.mxu1 %vm261_vm0, %v2304_v1  ;;  %v269_v6 = vsel %vm261_vm0, %v2304_v1, 0  ;;  %v2307_v7 = vld [vmem:[%s3260_s3 + $0x8] sm:$0xff]   ;;  %v2444_v11 = vld [vmem:[%s3261_s5 + $0x10] sm:$0xff] }
   0x3   :  { %2144 = vmatpush3.bf16.msra.mxu1 %v269_v6  ;;  %2145 = vmatprep.mubr.msk.bf16.mxu1 %vm236_vm1, %v2306_v5  ;;  %v2439_v10 = vld [vmem:[%s3261_s5] sm:$0xff]  ;;  %v2309_v12 = vld [vmem:[%s3260_s3 + $0x18] sm:$0xff]   ;;  %v2457_v14 = vld [vmem:[%s3261_s5 + $0x8] sm:$0xff] }
   0x4   :  { %2017 = vmatprep.subr.msk.bf16.mxu0 %vm261_vm0, %v2015_v3  ;;  %v263_v8 = vsel %vm261_vm0, %v2014_v4, 0  ;;  %110 = vperm.xlu0 %2293, %v2439_v10   ;;  %v2310_v13 = vld [vmem:[%s3260_s3 + $0x20] sm:$0xff]   ;;  %v2462_v15 = vld [vmem:[%s3261_s5 + $0x18] sm:$0xff]  ;;  %v2478_v17 = vld [vmem:[%s3261_s5 + $0x28] sm:$0xff] }
   0x5   :  { %272 = vmatpush1.bf16.msra.mxu0 %v263_v8  ;;  %120 = vperm.xlu1 %2294, %v2444_v11   ;;  %v2471_v16 = vld [vmem:[%s3261_s5 + $0x20] sm:$0xff]  ;;  %v2311_v18 = vld [vmem:[%s3260_s3 + $0x28] sm:$0xff]   ;;  %v2312_v19 = vld [vmem:[%s3260_s3 + $0x30] sm:$0xff]  }
   0x6   :  { %2146 = vmatmul.mubr.msk.bf16.vlgmr.msra.gmra.mrb[0].mxu1 %vm236_vm1, %v2307_v7  ;;  %v2490_v20 = vld [vmem:[%s3261_s5 + $0x30] sm:$0xff]  ;;  %v2496_v21 = vld [vmem:[%s3261_s5 + $0x38] sm:$0xff]  ;;  %v2505_v22 = vld [vmem:[%s3261_s5 + $0x40] sm:$0xff] }
   0x7   :  { %2149 = vmatprep.mubr.msk.bf16.mxu1 %vm236_vm1, %v2308_v9  ;;  %v2512_v23 = vld [vmem:[%s3261_s5 + $0x48] sm:$0xff]  ;;  %v2313_v24 = vld [vmem:[%s3260_s3 + $0x38] sm:$0xff]   ;;  %v2521_v25 = vld [vmem:[%s3261_s5 + $0x50] sm:$0xff] }
   0x8   :  { %2018 = vmatmul.mubr.msk.bf16.vlgmr.msra.gmra.mrb[0].mxu0 %vm236_vm1, %v2306_v5  ;;  %115 = vperm.xlu0 %2293, %v2457_v14   ;;  %v2527_v26 = vld [vmem:[%s3261_s5 + $0x58] sm:$0xff]  ;;  %v2535_v27 = vld [vmem:[%s3261_s5 + $0x60] sm:$0xff]  ;;  %v2543_v28 = vld [vmem:[%s3261_s5 + $0x68] sm:$0xff] }
   0x9   :  { %313 = vmatprep.mubr.bf16.mxu0 %v2366_v2  ;;  %125 = vperm.xlu1 %2294, %v2462_v15   ;;  %v2549_v29 = vld [vmem:[%s3261_s5 + $0x70] sm:$0xff]  ;;  %v2555_v30 = vld [vmem:[%s3261_s5 + $0x78] sm:$0xff]  ;;  %v2569_v31 = vld [vmem:[%s3262_s2] sm:$0xff]  }
   0xc   :  { %130 = vperm.xlu0 %2293, %v2471_v16  }
   0xd   :  { %135 = vperm.xlu1 %2294, %v2478_v17  }
   0xe   :  { %2150 = vmatmul.mubr.msk.bf16.gmra.mrb[4].mxu1 %vm236_vm1, %v2309_v12 }
   0xf   :  { %2153 = vmatprep.mubr.msk.bf16.mxu1 %vm236_vm1, %v2310_v13 }
  0x10   :  { %2019 = vmatmul.mubr.msk.bf16.gmra.mrb[4].mxu0 %vm236_vm1, %v2307_v7  ;;  %140 = vperm.xlu0 %2293, %v2490_v20  }
  0x11   :  { %323 = vmatprep.mubr.bf16.mxu0 %v2366_v2  ;;  %145 = vperm.xlu1 %2294, %v2496_v21  }
  0x14   :  { %150 = vperm.xlu0 %2293, %v2505_v22  }
  0x15   :  { %155 = vperm.xlu1 %2294, %v2512_v23  }
  0x16   :  { %2154 = vmatmul.mubr.msk.bf16.gmra.mrb[8].mxu1 %vm236_vm1, %v2311_v18 }
  0x17   :  { %2157 = vmatprep.mubr.msk.bf16.mxu1 %vm236_vm1, %v2312_v19 }
  0x18   :  { %2020 = vmatmul.mubr.msk.bf16.gmra.mrb[8].mxu0 %vm236_vm1, %v2308_v9  ;;  %160 = vperm.xlu0 %2293, %v2521_v25  }
  0x19   :  { %333 = vmatprep.mubr.bf16.mxu0 %v2366_v2  ;;  %165 = vperm.xlu1 %2294, %v2527_v26  }
  0x1c   :  { %170 = vperm.xlu0 %2293, %v2535_v27  }
  0x1d   :  { %175 = vperm.xlu1 %2294, %v2543_v28  }
  0x1e   :  { %2158 = vmatmul.mubr.msk.bf16.gmra.mrb[12].mxu1 %vm236_vm1, %v2313_v24 }
  0x1f   :  { %697 = vmatprep.mubr.bf16.mxu1 %v2366_v2 }
  0x20   :  { %2021 = vmatmul.mubr.msk.bf16.gmra.mrb[12].mxu0 %vm236_vm1, %v2309_v12  ;;  %180 = vperm.xlu0 %2293, %v2549_v29  }
  0x21   :  { %343 = vmatprep.mubr.bf16.mxu0 %v2366_v2  ;;  %185 = vperm.xlu1 %2294, %v2555_v30  }
  0x24   :  { %2295 = vset.pattern.permute.xlu0 %v2367_v43 }
  0x25   :  { %2296 = vset.pattern.permute.xlu1 %v2367_v43  ;;  %554 = vperm.xlu0 %2295, %v2439_v10  }
  0x26   :  { %558 = vperm.xlu1 %2296, %v2457_v14  }
  0x28   :  { %2022 = vmatmul.mubr.msk.bf16.gmra.mrb[16].mxu0 %vm236_vm1, %v2310_v13 }
  0x29   :  { %353 = vmatprep.mubr.bf16.mxu0 %v2366_v2  ;;  %566 = vperm.xlu0 %2295, %v2462_v15  }
  0x2a   :  { %562 = vperm.xlu1 %2296, %v2444_v11  }
  0x2d   :  { %574 = vperm.xlu0 %2295, %v2478_v17  }
  0x2e   :  { %570 = vperm.xlu1 %2296, %v2471_v16  }
  0x30   :  { %2023 = vmatmul.mubr.msk.bf16.gmra.mrb[20].mxu0 %vm236_vm1, %v2311_v18 }
  0x31   :  { %363 = vmatprep.mubr.bf16.mxu0 %v2366_v2  ;;  %582 = vperm.xlu0 %2295, %v2496_v21  }
  0x32   :  { %578 = vperm.xlu1 %2296, %v2490_v20  }
  0x35   :  { %590 = vperm.xlu0 %2295, %v2512_v23  }
  0x36   :  { %586 = vperm.xlu1 %2296, %v2505_v22  }
  0x38   :  { %2024 = vmatmul.mubr.msk.bf16.gmra.mrb[24].mxu0 %vm236_vm1, %v2312_v19 }
  0x39   :  { %373 = vmatprep.mubr.bf16.mxu0 %v2366_v2  ;;  %598 = vperm.xlu0 %2295, %v2527_v26  }
  0x3a   :  { %594 = vperm.xlu1 %2296, %v2521_v25  }
  0x3d   :  { %606 = vperm.xlu0 %2295, %v2543_v28  }
  0x3e   :  { %602 = vperm.xlu1 %2296, %v2535_v27  }
  0x40   :  { %2025 = vmatmul.mubr.msk.bf16.gmra.mrb[28].mxu0 %vm236_vm1, %v2313_v24 }
  0x41   :  { %2177 = vmatprep.mubr.bf16.mxu0 %v2569_v31  ;;  %614 = vperm.xlu0 %2295, %v2555_v30  }
  0x42   :  { %610 = vperm.xlu1 %2296, %v2549_v29  }
  0x83   :  { %v111_v32 = vpop.permute.xlu0 %110 }
  0x84   :  { %v121_v33 = vpop.permute.xlu1 %120 }
  0x87   :  { %v116_v34 = vpop.permute.xlu0 %115 }
  0x88   :  { %v2572_v35 = vpop.permute.xlu1 %125 }
  0x8b   :  { %v2574_v36 = vpop.permute.xlu0 %130 }
  0x8c   :  { %v2576_v37 = vpop.permute.xlu1 %135 }
  0x8f   :  { %v2578_v38 = vpop.permute.xlu0 %140 }
  0x90   :  { %v2580_v39 = vpop.permute.xlu1 %145 }
  0x93   :  { %v2582_v40 = vpop.permute.xlu0 %150 }
  0x94   :  { %v2584_v42 = vpop.permute.xlu1 %155 }
  0x97   :  { %v2591_v5 = vpop.permute.xlu0 %160 }
  0x98   :  { %v2593_v9 = vpop.permute.xlu1 %165 }
  0xd9   :  { %v2147_v41 = vpop.f32.mrb[0].mxu1 }
  0xda   :  { %v427_v45 = vadd.f32 %v2147_v41, %v121_v33  ;;  %v418_v46 = vpop.f32.mrb[1].mxu1 }
  0xdb   :  { %v305_v44 = vpop.f32.mrb[0].mxu0  ;;  %v419_v49 = vadd.f32 %v418_v46, %v111_v32  ;;  %v2148_v50 = vpop.f32.mrb[2].mxu1 }
  0xdc   :  { %v306_v47 = vadd.f32 %v305_v44, %v111_v32  ;;  %v307_v48 = vpop.f32.mrb[1].mxu0  ;;  %v489_v51 = vmax.f32 %v427_v45, 0.0  ;;  %v430_v54 = vadd.f32 %v2148_v50, %v2572_v35  ;;  %v421_v55 = vpop.f32.mrb[3].mxu1 }
  0xdd   :  { %v308_v52 = vadd.f32 %v307_v48, %v111_v32  ;;  %v309_v53 = vpop.f32.mrb[2].mxu0  ;;  %v483_v56 = vmax.f32 %v419_v49, 0.0  ;;  %v422_v59 = vadd.f32 %v421_v55, %v116_v34 }
  0xde   :  { %v310_v57 = vadd.f32 %v309_v53, %v116_v34  ;;  %v311_v58 = vpop.f32.mrb[3].mxu0  ;;  %v492_v60 = vmax.f32 %v430_v54, 0.0  ;;  %v481_v62 = vmax.f32 %v306_v47, 0.0  ;;  %v2605_v54 = vpop.permute.xlu0 %170 }
  0xdf   :  { %v312_v61 = vadd.f32 %v311_v58, %v116_v34  ;;  %v486_v0 = vmax.f32 %v422_v59, 0.0  ;;  %v482_v1 = vmax.f32 %v308_v52, 0.0  ;;  %v2607_v58 = vpop.permute.xlu1 %175 }
  0xe0   :  { %v484_v63 = vmax.f32 %v310_v57, 0.0  ;;  %v534_v4 = vpack.c.bf16 %v492_v60, %v489_v51 }
  0xe1   :  { %v485_v3 = vmax.f32 %v312_v61, 0.0  ;;  %v531_v7 = vpack.c.bf16 %v486_v0, %v483_v56  ;;  %v2151_v8 = vpop.f32.mrb[4].mxu1 }
  0xe2   :  { %v529_v6 = vpack.c.bf16 %v484_v63, %v481_v62  ;;  %v434_v14 = vpop.f32.mrb[5].mxu1  ;;  %v443_v11 = vadd.f32 %v2151_v8, %v2578_v38 }
  0xe3   :  { %v530_v12 = vpack.c.bf16 %v485_v3, %v482_v1  ;;  %v315_v13 = vpop.f32.mrb[4].mxu0  ;;  %v435_v19 = vadd.f32 %v434_v14, %v2574_v36  ;;  %v2152_v24 = vpop.f32.mrb[6].mxu1  ;;  %2161 = vmatprep.subr.bf16.mxu0 %v531_v7 }
  0xe4   :  { %v316_v15 = vadd.f32 %v315_v13, %v121_v33  ;;  %v317_v18 = vpop.f32.mrb[5].mxu0  ;;  %v446_v41 = vadd.f32 %v2152_v24, %v2580_v39  ;;  %v501_v43 = vmax.f32 %v443_v11, 0.0  ;;  %v437_v44 = vpop.f32.mrb[7].mxu1  ;;  %2162 = vmatpush3.bf16.msra.mxu0 %v531_v7 }
  0xe5   :  { %v318_v32 = vadd.f32 %v317_v18, %v121_v33  ;;  %v319_v34 = vpop.f32.mrb[6].mxu0  ;;  %665 = vmatprep.subr.bf16.mxu1 %v530_v12  ;;  %v495_v45 = vmax.f32 %v435_v19, 0.0  ;;  %v438_v17 = vadd.f32 %v437_v44, %v2576_v37  ;;  %2163 = vmatprep.subr.bf16.mxu0 %v534_v4 }
  0xe6   :  { %v320_v46 = vadd.f32 %v319_v34, %v2572_v35  ;;  %v321_v16 = vpop.f32.mrb[7].mxu0  ;;  %666 = vmatpush1.bf16.msra.mxu1 %v529_v6  ;;  %v504_v47 = vmax.f32 %v446_v41, 0.0  ;;  %v487_v33 = vmax.f32 %v316_v15, 0.0  ;;  %v2621_v15 = vpop.permute.xlu0 %180 }
  0xe7   :  { %v322_v48 = vadd.f32 %v321_v16, %v2572_v35  ;;  %v498_v50 = vmax.f32 %v438_v17, 0.0  ;;  %v488_v51 = vmax.f32 %v318_v32, 0.0 }
  0xe8   :  { %v490_v49 = vmax.f32 %v320_v46, 0.0  ;;  %2164 = vmatpush3.bf16.msra.mxu0 %v534_v4  ;;  %v540_v53 = vpack.c.bf16 %v504_v47, %v501_v43  ;;  %v2623_v43 = vpop.permute.xlu1 %185 }
  0xe9   :  { %v491_v52 = vmax.f32 %v322_v48, 0.0  ;;  %v537_v56 = vpack.c.bf16 %v498_v50, %v495_v45  ;;  %v2155_v57 = vpop.f32.mrb[8].mxu1 }
  0xea   :  { %v532_v55 = vpack.c.bf16 %v490_v49, %v487_v33  ;;  %v450_v60 = vpop.f32.mrb[9].mxu1  ;;  %v459_v20 = vadd.f32 %v2155_v57, %v2591_v5 }
  0xeb   :  { %v533_v59 = vpack.c.bf16 %v491_v52, %v488_v51  ;;  %v325_v35 = vpop.f32.mrb[8].mxu0  ;;  %v451_v62 = vadd.f32 %v450_v60, %v2582_v40  ;;  %v2156_v63 = vpop.f32.mrb[10].mxu1  ;;  %2165 = vmatprep.subr.bf16.mxu0 %v537_v56 }
  0xec   :  { %v326_v21 = vadd.f32 %v325_v35, %v2574_v36  ;;  %v327_v61 = vpop.f32.mrb[9].mxu0  ;;  %v462_v3 = vadd.f32 %v2156_v63, %v2593_v9  ;;  %v513_v4 = vmax.f32 %v459_v20, 0.0  ;;  %v453_v6 = vpop.f32.mrb[11].mxu1  ;;  %2166 = vmatpush3.bf16.msra.mxu0 %v537_v56 }
  0xed   :  { %v328_v0 = vadd.f32 %v327_v61, %v2574_v36  ;;  %v329_v1 = vpop.f32.mrb[10].mxu0  ;;  %667 = vmatprep.subr.bf16.mxu1 %v533_v59  ;;  %v507_v7 = vmax.f32 %v451_v62, 0.0  ;;  %v454_v8 = vadd.f32 %v453_v6, %v2584_v42  ;;  %2167 = vmatprep.subr.bf16.mxu0 %v540_v53 }
  0xee   :  { %v330_v22 = vadd.f32 %v329_v1, %v2576_v37  ;;  %v331_v23 = vpop.f32.mrb[11].mxu0  ;;  %668 = vmatpush1.bf16.msra.mxu1 %v532_v55  ;;  %v516_v12 = vmax.f32 %v462_v3, 0.0  ;;  %v493_v36 = vmax.f32 %v326_v21, 0.0 }
  0xef   :  { %v332_v13 = vadd.f32 %v331_v23, %v2576_v37  ;;  %v510_v11 = vmax.f32 %v454_v8, 0.0  ;;  %v494_v18 = vmax.f32 %v328_v0, 0.0 }
  0xf0   :  { %v496_v14 = vmax.f32 %v330_v22, 0.0  ;;  %2168 = vmatpush3.bf16.msra.mxu0 %v540_v53  ;;  %v546_v24 = vpack.c.bf16 %v516_v12, %v513_v4 }
  0xf1   :  { %v497_v19 = vmax.f32 %v332_v13, 0.0  ;;  %v543_v34 = vpack.c.bf16 %v510_v11, %v507_v7  ;;  %v2159_v41 = vpop.f32.mrb[12].mxu1  ;;  %v2644_v7 = vld [vmem:[%s3262_s2 + $0x8] sm:$0xff]  }
  0xf2   :  { %v535_v32 = vpack.c.bf16 %v496_v14, %v493_v36  ;;  %v466_v45 = vpop.f32.mrb[13].mxu1  ;;  %v475_v25 = vadd.f32 %v2159_v41, %v2621_v15  ;;  %v2317_v41 = vld [vmem:[%s3262_s2 + $0x18] sm:$0xff]  }
  0xf3   :  { %v536_v44 = vpack.c.bf16 %v497_v19, %v494_v18  ;;  %v335_v37 = vpop.f32.mrb[12].mxu0  ;;  %v467_v16 = vadd.f32 %v466_v45, %v2605_v54  ;;  %v2160_v17 = vpop.f32.mrb[14].mxu1  ;;  %2169 = vmatprep.subr.bf16.mxu0 %v543_v34 }
  0xf4   :  { %v336_v26 = vadd.f32 %v335_v37, %v2578_v38  ;;  %v337_v46 = vpop.f32.mrb[13].mxu0  ;;  %v478_v33 = vadd.f32 %v2160_v17, %v2623_v43  ;;  %v525_v49 = vmax.f32 %v475_v25, 0.0  ;;  %v469_v50 = vpop.f32.mrb[15].mxu1  ;;  %2170 = vmatpush3.bf16.msra.mxu0 %v543_v34 }
  0xf5   :  { %v338_v47 = vadd.f32 %v337_v46, %v2578_v38  ;;  %v339_v48 = vpop.f32.mrb[14].mxu0  ;;  %669 = vmatprep.subr.bf16.mxu1 %v536_v44  ;;  %v519_v51 = vmax.f32 %v467_v16, 0.0  ;;  %v470_v52 = vadd.f32 %v469_v50, %v2607_v58  ;;  %2171 = vmatprep.subr.bf16.mxu0 %v546_v24 }
  0xf6   :  { %v340_v27 = vadd.f32 %v339_v48, %v2580_v39  ;;  %v341_v28 = vpop.f32.mrb[15].mxu0  ;;  %670 = vmatpush1.bf16.msra.mxu1 %v535_v32  ;;  %v528_v53 = vmax.f32 %v478_v33, 0.0  ;;  %v499_v38 = vmax.f32 %v336_v26, 0.0 }
  0xf7   :  { %v342_v55 = vadd.f32 %v341_v28, %v2580_v39  ;;  %v522_v57 = vmax.f32 %v470_v52, 0.0  ;;  %v500_v59 = vmax.f32 %v338_v47, 0.0 }
  0xf8   :  { %v502_v56 = vmax.f32 %v340_v27, 0.0  ;;  %2172 = vmatpush3.bf16.msra.mxu0 %v546_v24  ;;  %v552_v60 = vpack.c.bf16 %v528_v53, %v525_v49 }
  0xf9   :  { %v503_v35 = vmax.f32 %v342_v55, 0.0  ;;  %v549_v21 = vpack.c.bf16 %v522_v57, %v519_v51  ;;  %v2319_v51 = vld [vmem:[%s3262_s2 + $0x28] sm:$0xff]  }
  0xfa   :  { %v538_v20 = vpack.c.bf16 %v502_v56, %v499_v38 }
  0xfb   :  { %v539_v61 = vpack.c.bf16 %v503_v35, %v500_v59  ;;  %v345_v62 = vpop.f32.mrb[16].mxu0  ;;  %2173 = vmatprep.subr.bf16.mxu0 %v549_v21 }
  0xfc   :  { %v346_v63 = vadd.f32 %v345_v62, %v2582_v40  ;;  %v347_v0 = vpop.f32.mrb[17].mxu0  ;;  %2174 = vmatpush3.bf16.msra.mxu0 %v549_v21 }
  0xfd   :  { %v348_v39 = vadd.f32 %v347_v0, %v2582_v40  ;;  %v349_v29 = vpop.f32.mrb[18].mxu0  ;;  %671 = vmatprep.subr.bf16.mxu1 %v539_v61  ;;  %2175 = vmatprep.subr.bf16.mxu0 %v552_v60  ;;  %v2649_v40 = vld [vmem:[%s3262_s2 + $0x10] sm:$0xff]   ;;  %v2321_v61 = vld [vmem:[%s3262_s2 + $0x38] sm:$0xff]  }
  0xfe   :  { %v350_v30 = vadd.f32 %v349_v29, %v2584_v42  ;;  %v351_v1 = vpop.f32.mrb[19].mxu0  ;;  %672 = vmatpush1.bf16.msra.mxu1 %v538_v20  ;;  %v505_v4 = vmax.f32 %v346_v63, 0.0  ;;  %v2697_v29 = vpop.permute.xlu0 %554 }
  0xff   :  { %v352_v3 = vadd.f32 %v351_v1, %v2584_v42  ;;  %v506_v22 = vmax.f32 %v348_v39, 0.0 }
 0x100   :  { %v508_v6 = vmax.f32 %v350_v30, 0.0  ;;  %2176 = vmatpush3.bf16.msra.mxu0 %v552_v60 }
 0x101   :  { %v509_v23 = vmax.f32 %v352_v3, 0.0 }
 0x102   :  { %v541_v8 = vpack.c.bf16 %v508_v6, %v505_v4  ;;  %v2701_v1 = vpop.permute.xlu0 %566 }
 0x103   :  { %v542_v12 = vpack.c.bf16 %v509_v23, %v506_v22  ;;  %v355_v13 = vpop.f32.mrb[20].mxu0  ;;  %2178 = vmatmul.mubr.bf16.vlgmr.msra.gmra.mrb[32].mxu0 %v2644_v7 }
 0x104   :  { %v356_v42 = vadd.f32 %v355_v13, %v2591_v5  ;;  %v357_v36 = vpop.f32.mrb[21].mxu0  ;;  %2181 = vmatprep.mubr.bf16.mxu0 %v2649_v40 }
 0x105   :  { %v358_v14 = vadd.f32 %v357_v36, %v2591_v5  ;;  %v359_v11 = vpop.f32.mrb[22].mxu0  ;;  %673 = vmatprep.subr.bf16.mxu1 %v542_v12  ;;  %v2318_v5 = vld [vmem:[%s3262_s2 + $0x20] sm:$0xff]  }
 0x106   :  { %v360_v18 = vadd.f32 %v359_v11, %v2593_v9  ;;  %v361_v19 = vpop.f32.mrb[23].mxu0  ;;  %674 = vmatpush1.bf16.msra.mxu1 %v541_v8  ;;  %v511_v32 = vmax.f32 %v356_v42, 0.0  ;;  %v2705_v4 = vpop.permute.xlu0 %574 }
 0x107   :  { %v362_v24 = vadd.f32 %v361_v19, %v2593_v9  ;;  %v512_v44 = vmax.f32 %v358_v14, 0.0 }
 0x108   :  { %v514_v34 = vmax.f32 %v360_v18, 0.0 }
 0x109   :  { %v515_v37 = vmax.f32 %v362_v24, 0.0 }
 0x10a   :  { %v544_v45 = vpack.c.bf16 %v514_v34, %v511_v32  ;;  %v2709_v22 = vpop.permute.xlu0 %582 }
 0x10b   :  { %v545_v25 = vpack.c.bf16 %v515_v37, %v512_v44  ;;  %v365_v26 = vpop.f32.mrb[24].mxu0  ;;  %2182 = vmatmul.mubr.bf16.gmra.mrb[36].mxu0 %v2317_v41 }
 0x10c   :  { %v366_v46 = vadd.f32 %v365_v26, %v2605_v54  ;;  %v367_v16 = vpop.f32.mrb[25].mxu0  ;;  %2185 = vmatprep.mubr.bf16.mxu0 %v2318_v5 }
 0x10d   :  { %v368_v9 = vadd.f32 %v367_v16, %v2605_v54  ;;  %v369_v17 = vpop.f32.mrb[26].mxu0  ;;  %675 = vmatprep.subr.bf16.mxu1 %v545_v25  ;;  %v2320_v54 = vld [vmem:[%s3262_s2 + $0x30] sm:$0xff]  }
 0x10e   :  { %v370_v47 = vadd.f32 %v369_v17, %v2607_v58  ;;  %v371_v48 = vpop.f32.mrb[27].mxu0  ;;  %676 = vmatpush1.bf16.msra.mxu1 %v544_v45  ;;  %v517_v49 = vmax.f32 %v366_v46, 0.0  ;;  %v2717_v24 = vpop.permute.xlu0 %590 }
 0x10f   :  { %v372_v33 = vadd.f32 %v371_v48, %v2607_v58  ;;  %v518_v27 = vmax.f32 %v368_v9, 0.0 }
 0x110   :  { %v520_v50 = vmax.f32 %v370_v47, 0.0 }
 0x111   :  { %v521_v28 = vmax.f32 %v372_v33, 0.0 }
 0x112   :  { %v547_v52 = vpack.c.bf16 %v520_v50, %v517_v49  ;;  %v2726_v47 = vpop.permute.xlu0 %598 }
 0x113   :  { %v548_v53 = vpack.c.bf16 %v521_v28, %v518_v27  ;;  %v375_v55 = vpop.f32.mrb[28].mxu0  ;;  %2186 = vmatmul.mubr.bf16.gmra.mrb[40].mxu0 %v2319_v51 }
 0x114   :  { %v376_v38 = vadd.f32 %v375_v55, %v2621_v15  ;;  %v377_v56 = vpop.f32.mrb[29].mxu0  ;;  %2189 = vmatprep.mubr.bf16.mxu0 %v2320_v54 }
 0x115   :  { %v378_v58 = vadd.f32 %v377_v56, %v2621_v15  ;;  %v379_v57 = vpop.f32.mrb[30].mxu0  ;;  %677 = vmatprep.subr.bf16.mxu1 %v548_v53  ;;  %v2370_v15 = vmov 2  }
 0x116   :  { %v380_v59 = vadd.f32 %v379_v57, %v2623_v43  ;;  %v381_v35 = vpop.f32.mrb[31].mxu0  ;;  %678 = vmatpush1.bf16.msra.mxu1 %v547_v52  ;;  %v523_v20 = vmax.f32 %v376_v38, 0.0  ;;  %2297 = vset.pattern.permute.xlu1 %v2370_v15  ;;  %v2733_v55 = vpop.permute.xlu0 %606 }
 0x117   :  { %v382_v60 = vadd.f32 %v381_v35, %v2623_v43  ;;  %v524_v62 = vmax.f32 %v378_v58, 0.0  ;;  %948 = vperm.xlu1 %2297, %v2439_v10   ;;  %v2695_v43 = vpop.permute.xlu1 %558 }
 0x118   :  { %v526_v21 = vmax.f32 %v380_v59, 0.0 }
 0x119   :  { %v527_v63 = vmax.f32 %v382_v60, 0.0 }
 0x11a   :  { %v550_v0 = vpack.c.bf16 %v526_v21, %v523_v20 }
 0x11b   :  { %v551_v39 = vpack.c.bf16 %v527_v63, %v524_v62  ;;  %2190 = vmatmul.mubr.bf16.gmra.mrb[44].mxu0 %v2321_v61  ;;  %v2699_v30 = vpop.permute.xlu1 %562  ;;  %v2741_v63 = vpop.permute.xlu0 %614 }
 0x11c   :  { %983 = vmatprep.mubr.bf16.mxu0 %v2366_v2 }
 0x11d   :  { %679 = vmatprep.subr.bf16.mxu1 %v551_v39 }
 0x11e   :  { %680 = vmatpush1.bf16.msra.mxu1 %v550_v0 }
 0x11f   :  { %v2703_v3 = vpop.permute.xlu1 %570 }
 0x121   :  { %698 = vmatmul.mubr.bf16.vlgmr.msra.gmra.mrb[16].mxu1 %v2569_v31  ;;  %v2368_v31 = vmov 0.0  }
 0x122   :  { %707 = vmatprep.mubr.bf16.mxu1 %v2366_v2  ;;  %2193 = vmatprep.subr.bf16.mxu1 %v2368_v31 }
 0x123   :  { %v2707_v6 = vpop.permute.xlu1 %578 }
 0x127   :  { %v2715_v11 = vpop.permute.xlu1 %586 }
 0x129   :  { %708 = vmatmul.mubr.bf16.gmra.mrb[20].mxu1 %v2644_v7 }
 0x12a   :  { %717 = vmatprep.mubr.bf16.mxu1 %v2366_v2 }
 0x12b   :  { %v2721_v25 = vpop.permute.xlu1 %594 }
 0x12f   :  { %v2729_v27 = vpop.permute.xlu1 %602 }
 0x131   :  { %718 = vmatmul.mubr.bf16.gmra.mrb[24].mxu1 %v2649_v40 }
 0x132   :  { %727 = vmatprep.mubr.bf16.mxu1 %v2366_v2 }
 0x133   :  { %v2738_v20 = vpop.permute.xlu1 %610 }
 0x139   :  { %728 = vmatmul.mubr.bf16.gmra.mrb[28].mxu1 %v2317_v41 }
 0x13a   :  { %737 = vmatprep.mubr.bf16.mxu1 %v2366_v2 }
 0x141   :  { %738 = vmatmul.mubr.bf16.gmra.mrb[32].mxu1 %v2318_v5 }
 0x142   :  { %747 = vmatprep.mubr.bf16.mxu1 %v2366_v2 }
 0x149   :  { %748 = vmatmul.mubr.bf16.gmra.mrb[36].mxu1 %v2319_v51 }
 0x14a   :  { %757 = vmatprep.mubr.bf16.mxu1 %v2366_v2 }
 0x151   :  { %758 = vmatmul.mubr.bf16.gmra.mrb[40].mxu1 %v2320_v54 }
 0x152   :  { %767 = vmatprep.mubr.bf16.mxu1 %v2366_v2 }
 0x159   :  { %768 = vmatmul.mubr.bf16.gmra.mrb[44].mxu1 %v2321_v61 }
 0x15a   :  { %2209 = vmatprep.mubr.msk.bf16.mxu1 %vm2369_vm2, %v2368_v31 }
 0x1d6   :  { %v2179_v7 = vpop.f32.mrb[32].mxu0 }
 0x1d7   :  { %v812_v23 = vpop.f32.mrb[33].mxu0  ;;  %v821_v10 = vadd.f32 %v2179_v7, %v2699_v30 }
 0x1d8   :  { %v2180_v40 = vpop.f32.mrb[34].mxu0  ;;  %v813_v8 = vadd.f32 %v812_v23, %v2697_v29 }
 0x1d9   :  { %v815_v12 = vpop.f32.mrb[35].mxu0  ;;  %v883_v13 = vmax.f32 %v821_v10, 0.0  ;;  %v824_v42 = vadd.f32 %v2180_v40, %v2701_v1 }
 0x1da   :  { %v877_v36 = vmax.f32 %v813_v8, 0.0  ;;  %v816_v14 = vadd.f32 %v815_v12, %v2695_v43 }
 0x1db   :  { %v886_v18 = vmax.f32 %v824_v42, 0.0 }
 0x1dc   :  { %v880_v19 = vmax.f32 %v816_v14, 0.0 }
 0x1dd   :  { %v928_v32 = vpack.c.bf16 %v886_v18, %v883_v13 }
 0x1de   :  { %v925_v34 = vpack.c.bf16 %v880_v19, %v877_v36  ;;  %v2183_v41 = vpop.f32.mrb[36].mxu0 }
 0x1df   :  { %v828_v44 = vpop.f32.mrb[37].mxu0  ;;  %v837_v37 = vadd.f32 %v2183_v41, %v2707_v6 }
 0x1e0   :  { %v2184_v5 = vpop.f32.mrb[38].mxu0  ;;  %2194 = vmatpush3.bf16.msra.mxu1 %v925_v34  ;;  %v829_v45 = vadd.f32 %v828_v44, %v2703_v3 }
 0x1e1   :  { %v831_v26 = vpop.f32.mrb[39].mxu0  ;;  %2195 = vmatprep.subr.bf16.mxu1 %v2368_v31  ;;  %v895_v46 = vmax.f32 %v837_v37, 0.0  ;;  %v840_v16 = vadd.f32 %v2184_v5, %v2709_v22 }
 0x1e2   :  { %v889_v9 = vmax.f32 %v829_v45, 0.0  ;;  %v832_v17 = vadd.f32 %v831_v26, %v2705_v4 }
 0x1e3   :  { %v898_v48 = vmax.f32 %v840_v16, 0.0 }
 0x1e4   :  { %v892_v33 = vmax.f32 %v832_v17, 0.0  ;;  %2196 = vmatpush3.bf16.msra.mxu1 %v928_v32 }
 0x1e5   :  { %v934_v49 = vpack.c.bf16 %v898_v48, %v895_v46  ;;  %2197 = vmatprep.subr.bf16.mxu1 %v2368_v31 }
 0x1e6   :  { %v931_v50 = vpack.c.bf16 %v892_v33, %v889_v9  ;;  %v2187_v51 = vpop.f32.mrb[40].mxu0 }
 0x1e7   :  { %v844_v28 = vpop.f32.mrb[41].mxu0  ;;  %v853_v54 = vadd.f32 %v2187_v51, %v2721_v25 }
 0x1e8   :  { %v2188_v52 = vpop.f32.mrb[42].mxu0  ;;  %2198 = vmatpush3.bf16.msra.mxu1 %v931_v50  ;;  %v845_v53 = vadd.f32 %v844_v28, %v2715_v11 }
 0x1e9   :  { %v847_v38 = vpop.f32.mrb[43].mxu0  ;;  %2199 = vmatprep.subr.bf16.mxu1 %v2368_v31  ;;  %v907_v56 = vmax.f32 %v853_v54, 0.0  ;;  %v856_v58 = vadd.f32 %v2188_v52, %v2726_v47 }
 0x1ea   :  { %v901_v57 = vmax.f32 %v845_v53, 0.0  ;;  %v848_v59 = vadd.f32 %v847_v38, %v2717_v24 }
 0x1eb   :  { %v910_v35 = vmax.f32 %v856_v58, 0.0 }
 0x1ec   :  { %v904_v60 = vmax.f32 %v848_v59, 0.0  ;;  %2200 = vmatpush3.bf16.msra.mxu1 %v934_v49  ;;  %v2758_v49 = vld [vmem:[%s3262_s2 + $0x80] sm:$0xf] }
 0x1ed   :  { %v940_v21 = vpack.c.bf16 %v910_v35, %v907_v56  ;;  %2201 = vmatprep.subr.bf16.mxu1 %v2368_v31 }
 0x1ee   :  { %v937_v61 = vpack.c.bf16 %v904_v60, %v901_v57  ;;  %v2191_v62 = vpop.f32.mrb[44].mxu0 }
 0x1ef   :  { %v860_v0 = vpop.f32.mrb[45].mxu0  ;;  %v869_v39 = vadd.f32 %v2191_v62, %v2738_v20 }
 0x1f0   :  { %v2192_v15 = vpop.f32.mrb[46].mxu0  ;;  %2202 = vmatpush3.bf16.msra.mxu1 %v937_v61  ;;  %v861_v7 = vadd.f32 %v860_v0, %v2729_v27 }
 0x1f1   :  { %v863_v23 = vpop.f32.mrb[47].mxu0  ;;  %2203 = vmatprep.subr.bf16.mxu1 %v2368_v31  ;;  %v919_v10 = vmax.f32 %v869_v39, 0.0  ;;  %v872_v40 = vadd.f32 %v2192_v15, %v2741_v63 }
 0x1f2   :  { %v913_v8 = vmax.f32 %v861_v7, 0.0  ;;  %v864_v12 = vadd.f32 %v863_v23, %v2733_v55 }
 0x1f3   :  { %v922_v42 = vmax.f32 %v872_v40, 0.0 }
 0x1f4   :  { %v699_v13 = vpop.f32.mrb[16].mxu1  ;;  %v916_v18 = vmax.f32 %v864_v12, 0.0  ;;  %2204 = vmatpush3.bf16.msra.mxu1 %v940_v21 }
 0x1f5   :  { %v700_v36 = vadd.f32 %v699_v13, %v2697_v29  ;;  %v701_v14 = vpop.f32.mrb[17].mxu1  ;;  %v946_v34 = vpack.c.bf16 %v922_v42, %v919_v10  ;;  %2205 = vmatprep.subr.bf16.mxu1 %v2368_v31 }
 0x1f6   :  { %v702_v19 = vadd.f32 %v701_v14, %v2697_v29  ;;  %v703_v32 = vpop.f32.mrb[18].mxu1  ;;  %v943_v37 = vpack.c.bf16 %v916_v18, %v913_v8 }
 0x1f7   :  { %v704_v41 = vadd.f32 %v703_v32, %v2695_v43  ;;  %v705_v44 = vpop.f32.mrb[19].mxu1  ;;  %v875_v45 = vmax.f32 %v700_v36, 0.0 }
 0x1f8   :  { %v706_v5 = vadd.f32 %v705_v44, %v2695_v43  ;;  %2206 = vmatpush3.bf16.msra.mxu1 %v943_v37  ;;  %v876_v46 = vmax.f32 %v702_v19, 0.0 }
 0x1f9   :  { %v878_v26 = vmax.f32 %v704_v41, 0.0  ;;  %2207 = vmatprep.subr.bf16.mxu1 %v2368_v31 }
 0x1fa   :  { %v879_v16 = vmax.f32 %v706_v5, 0.0 }
 0x1fb   :  { %v923_v9 = vpack.c.bf16 %v878_v26, %v875_v45 }
 0x1fc   :  { %v924_v17 = vpack.c.bf16 %v879_v16, %v876_v46  ;;  %v709_v29 = vpop.f32.mrb[20].mxu1  ;;  %2208 = vmatpush3.bf16.msra.mxu1 %v946_v34 }
 0x1fd   :  { %v710_v48 = vadd.f32 %v709_v29, %v2699_v30  ;;  %v711_v33 = vpop.f32.mrb[21].mxu1 }
 0x1fe   :  { %v712_v43 = vadd.f32 %v711_v33, %v2699_v30  ;;  %v713_v50 = vpop.f32.mrb[22].mxu1  ;;  %951 = vmatprep.subr.bf16.mxu0 %v924_v17 }
 0x1ff   :  { %v714_v51 = vadd.f32 %v713_v50, %v2701_v1  ;;  %v715_v28 = vpop.f32.mrb[23].mxu1  ;;  %952 = vmatpush1.bf16.msra.mxu0 %v923_v9  ;;  %2210 = vmatmul.mubr.bf16.vlgmr.msra.gmra.mrb[48].mxu1 %v2758_v49  ;;  %v881_v52 = vmax.f32 %v710_v48, 0.0 }
 0x200   :  { %v716_v54 = vadd.f32 %v715_v28, %v2701_v1  ;;  %v882_v38 = vmax.f32 %v712_v43, 0.0 }
 0x201   :  { %v884_v53 = vmax.f32 %v714_v51, 0.0 }
 0x202   :  { %v885_v56 = vmax.f32 %v716_v54, 0.0 }
 0x203   :  { %v926_v58 = vpack.c.bf16 %v884_v53, %v881_v52 }
 0x204   :  { %v927_v57 = vpack.c.bf16 %v885_v56, %v882_v38  ;;  %v719_v59 = vpop.f32.mrb[24].mxu1 }
 0x205   :  { %v720_v35 = vadd.f32 %v719_v59, %v2703_v3  ;;  %v721_v30 = vpop.f32.mrb[25].mxu1 }
 0x206   :  { %v722_v60 = vadd.f32 %v721_v30, %v2703_v3  ;;  %v723_v21 = vpop.f32.mrb[26].mxu1  ;;  %953 = vmatprep.subr.bf16.mxu0 %v927_v57 }
 0x207   :  { %v724_v61 = vadd.f32 %v723_v21, %v2705_v4  ;;  %v725_v62 = vpop.f32.mrb[27].mxu1  ;;  %954 = vmatpush1.bf16.msra.mxu0 %v926_v58  ;;  %v887_v0 = vmax.f32 %v720_v35, 0.0 }
 0x208   :  { %v726_v1 = vadd.f32 %v725_v62, %v2705_v4  ;;  %v888_v15 = vmax.f32 %v722_v60, 0.0 }
 0x209   :  { %v890_v39 = vmax.f32 %v724_v61, 0.0 }
 0x20a   :  { %v891_v7 = vmax.f32 %v726_v1, 0.0 }
 0x20b   :  { %v929_v23 = vpack.c.bf16 %v890_v39, %v887_v0 }
 0x20c   :  { %v930_v10 = vpack.c.bf16 %v891_v7, %v888_v15  ;;  %v729_v40 = vpop.f32.mrb[28].mxu1 }
 0x20d   :  { %v730_v8 = vadd.f32 %v729_v40, %v2707_v6  ;;  %v731_v12 = vpop.f32.mrb[29].mxu1 }
 0x20e   :  { %v732_v3 = vadd.f32 %v731_v12, %v2707_v6  ;;  %v733_v13 = vpop.f32.mrb[30].mxu1  ;;  %955 = vmatprep.subr.bf16.mxu0 %v930_v10 }
 0x20f   :  { %v734_v42 = vadd.f32 %v733_v13, %v2709_v22  ;;  %v735_v36 = vpop.f32.mrb[31].mxu1  ;;  %956 = vmatpush1.bf16.msra.mxu0 %v929_v23  ;;  %v893_v14 = vmax.f32 %v730_v8, 0.0 }
 0x210   :  { %v736_v4 = vadd.f32 %v735_v36, %v2709_v22  ;;  %v894_v19 = vmax.f32 %v732_v3, 0.0 }
 0x211   :  { %v896_v18 = vmax.f32 %v734_v42, 0.0 }
 0x212   :  { %v897_v32 = vmax.f32 %v736_v4, 0.0 }
 0x213   :  { %v932_v34 = vpack.c.bf16 %v896_v18, %v893_v14 }
 0x214   :  { %v933_v41 = vpack.c.bf16 %v897_v32, %v894_v19  ;;  %v739_v44 = vpop.f32.mrb[32].mxu1 }
 0x215   :  { %v740_v37 = vadd.f32 %v739_v44, %v2715_v11  ;;  %v741_v5 = vpop.f32.mrb[33].mxu1 }
 0x216   :  { %v742_v6 = vadd.f32 %v741_v5, %v2715_v11  ;;  %v743_v45 = vpop.f32.mrb[34].mxu1  ;;  %957 = vmatprep.subr.bf16.mxu0 %v933_v41 }
 0x217   :  { %v744_v26 = vadd.f32 %v743_v45, %v2717_v24  ;;  %v745_v46 = vpop.f32.mrb[35].mxu1  ;;  %958 = vmatpush1.bf16.msra.mxu0 %v932_v34  ;;  %v899_v16 = vmax.f32 %v740_v37, 0.0 }
 0x218   :  { %v746_v22 = vadd.f32 %v745_v46, %v2717_v24  ;;  %v900_v17 = vmax.f32 %v742_v6, 0.0 }
 0x219   :  { %v902_v9 = vmax.f32 %v744_v26, 0.0 }
 0x21a   :  { %v903_v29 = vmax.f32 %v746_v22, 0.0 }
 0x21b   :  { %v935_v48 = vpack.c.bf16 %v902_v9, %v899_v16 }
 0x21c   :  { %v936_v33 = vpack.c.bf16 %v903_v29, %v900_v17  ;;  %v749_v43 = vpop.f32.mrb[36].mxu1 }
 0x21d   :  { %v750_v50 = vadd.f32 %v749_v43, %v2721_v25  ;;  %v751_v51 = vpop.f32.mrb[37].mxu1  ;;  %v1091_v43 = vld [vmem:[%s3264_s1 + $0x10] sm:$0xff] }
 0x21e   :  { %v752_v11 = vadd.f32 %v751_v51, %v2721_v25  ;;  %v753_v28 = vpop.f32.mrb[38].mxu1  ;;  %959 = vmatprep.subr.bf16.mxu0 %v936_v33  ;;  %v2812_v51 = vld [vmem:[%s3261_s5] sm:$0xff] }
 0x21f   :  { %v754_v54 = vadd.f32 %v753_v28, %v2726_v47  ;;  %v755_v52 = vpop.f32.mrb[39].mxu1  ;;  %960 = vmatpush1.bf16.msra.mxu0 %v935_v48  ;;  %v905_v53 = vmax.f32 %v750_v50, 0.0  ;;  %v2371_v48 = vmov 3   ;;  %v2806_v50 = vld [vmem:[%s3261_s5 + $0x8] sm:$0xff] }
 0x220   :  { %v756_v24 = vadd.f32 %v755_v52, %v2726_v47  ;;  %v906_v56 = vmax.f32 %v752_v11, 0.0  ;;  %2299 = vset.pattern.permute.xlu1 %v2371_v48  ;;  %2298 = vset.pattern.permute.xlu0 %v2371_v48  ;;  %v2825_v52 = vld [vmem:[%s3261_s5 + $0x18] sm:$0xff]  ;;  %v1090_v48 = vld [vmem:[%s3264_s1 + $0x8] sm:$0xff] }
 0x221   :  { %v908_v38 = vmax.f32 %v754_v54, 0.0  ;;  %1103 = vperm.xlu1 %2299, %v2806_v50   ;;  %1099 = vperm.xlu0 %2298, %v2812_v51   ;;  %v2819_v54 = vld [vmem:[%s3261_s5 + $0x10] sm:$0xff] }
 0x222   :  { %v909_v58 = vmax.f32 %v756_v24, 0.0 }
 0x223   :  { %v938_v57 = vpack.c.bf16 %v908_v38, %v905_v53  ;;  %v2836_v38 = vld [vmem:[%s3263_s4 + $0x8] sm:$0xff]  }
 0x224   :  { %v939_v59 = vpack.c.bf16 %v909_v58, %v906_v56  ;;  %v759_v35 = vpop.f32.mrb[40].mxu1  ;;  %v2841_v56 = vld [vmem:[%s3263_s4 + $0x10] sm:$0xff]   ;;  %v2846_v58 = vld [vmem:[%s3261_s5 + $0x20] sm:$0xff] }
 0x225   :  { %v760_v30 = vadd.f32 %v759_v35, %v2729_v27  ;;  %v761_v60 = vpop.f32.mrb[41].mxu1  ;;  %1107 = vperm.xlu1 %2299, %v2819_v54   ;;  %1111 = vperm.xlu0 %2298, %v2825_v52   ;;  %v2868_v35 = vld [vmem:[%s3261_s5 + $0x38] sm:$0xff] }
 0x226   :  { %v762_v25 = vadd.f32 %v761_v60, %v2729_v27  ;;  %v763_v21 = vpop.f32.mrb[42].mxu1  ;;  %961 = vmatprep.subr.bf16.mxu0 %v939_v59  ;;  %v2862_v59 = vld [vmem:[%s3261_s5 + $0x30] sm:$0xff]  ;;  %v2879_v60 = vld [vmem:[%s3263_s4 + $0x20] sm:$0xff]  }
 0x227   :  { %v764_v61 = vadd.f32 %v763_v21, %v2733_v55  ;;  %v765_v62 = vpop.f32.mrb[43].mxu1  ;;  %962 = vmatpush1.bf16.msra.mxu0 %v938_v57  ;;  %v911_v1 = vmax.f32 %v760_v30, 0.0  ;;  %v2852_v57 = vld [vmem:[%s3261_s5 + $0x28] sm:$0xff]  ;;  %v2874_v30 = vld [vmem:[%s3263_s4 + $0x18] sm:$0xff]  }
 0x228   :  { %v766_v47 = vadd.f32 %v765_v62, %v2733_v55  ;;  %v912_v39 = vmax.f32 %v762_v25, 0.0  ;;  %v2884_v25 = vld [vmem:[%s3261_s5 + $0x40] sm:$0xff]  ;;  %v2890_v21 = vld [vmem:[%s3261_s5 + $0x48] sm:$0xff] }
 0x229   :  { %v914_v0 = vmax.f32 %v764_v61, 0.0  ;;  %1115 = vperm.xlu1 %2299, %v2846_v58   ;;  %1119 = vperm.xlu0 %2298, %v2852_v57  }
 0x22a   :  { %v915_v15 = vmax.f32 %v766_v47, 0.0 }
 0x22b   :  { %v941_v7 = vpack.c.bf16 %v914_v0, %v911_v1  ;;  %v2901_v1 = vld [vmem:[%s3261_s5 + $0x50] sm:$0xff] }
 0x22c   :  { %v942_v23 = vpack.c.bf16 %v915_v15, %v912_v39  ;;  %v769_v10 = vpop.f32.mrb[44].mxu1  ;;  %v2908_v15 = vld [vmem:[%s3261_s5 + $0x58] sm:$0xff] }
 0x22d   :  { %v770_v40 = vadd.f32 %v769_v10, %v2738_v20  ;;  %v771_v8 = vpop.f32.mrb[45].mxu1  ;;  %1123 = vperm.xlu1 %2299, %v2862_v59   ;;  %1127 = vperm.xlu0 %2298, %v2868_v35  }
 0x22e   :  { %v772_v27 = vadd.f32 %v771_v8, %v2738_v20  ;;  %v773_v12 = vpop.f32.mrb[46].mxu1  ;;  %963 = vmatprep.subr.bf16.mxu0 %v942_v23  ;;  %v2793_v20 = vld [vmem:[%s3263_s4] sm:$0xff]  }
 0x22f   :  { %v774_v3 = vadd.f32 %v773_v12, %v2741_v63  ;;  %v775_v13 = vpop.f32.mrb[47].mxu1  ;;  %964 = vmatpush1.bf16.msra.mxu0 %v941_v7  ;;  %v917_v42 = vmax.f32 %v770_v40, 0.0  ;;  %2215 = vmatprep.mubr.msk.bf16.mxu1 %vm236_vm1, %v2793_v20  ;;  %v2914_v40 = vld [vmem:[%s3263_s4 + $0x28] sm:$0xff]   ;;  %v2924_v12 = vld [vmem:[%s3261_s5 + $0x60] sm:$0xff] }
 0x230   :  { %v776_v55 = vadd.f32 %v775_v13, %v2741_v63  ;;  %v918_v4 = vmax.f32 %v772_v27, 0.0  ;;  %v2797_v63 = vpop.permute.xlu1 %948  ;;  %v2919_v27 = vld [vmem:[%s3263_s4 + $0x30] sm:$0xff]   ;;  %v2930_v13 = vld [vmem:[%s3261_s5 + $0x68] sm:$0xff] }
 0x231   :  { %v920_v36 = vmax.f32 %v774_v3, 0.0  ;;  %1131 = vperm.xlu1 %2299, %v2884_v25   ;;  %1135 = vperm.xlu0 %2298, %v2890_v21  }
 0x232   :  { %v921_v14 = vmax.f32 %v776_v55, 0.0 }
 0x233   :  { %v944_v18 = vpack.c.bf16 %v920_v36, %v917_v42 }
 0x234   :  { %v945_v19 = vpack.c.bf16 %v921_v14, %v918_v4  ;;  %v2940_v4 = vld [vmem:[%s3261_s5 + $0x70] sm:$0xff] }
 0x235   :  { %1139 = vperm.xlu1 %2299, %v2901_v1   ;;  %1143 = vperm.xlu0 %2298, %v2908_v15  }
 0x236   :  { %965 = vmatprep.subr.bf16.mxu0 %v945_v19  ;;  %v2329_v19 = vld [vmem:[%s3263_s4 + $0x38] sm:$0xff]  }
 0x237   :  { %966 = vmatpush1.bf16.msra.mxu0 %v944_v18  ;;  %v2946_v18 = vld [vmem:[%s3261_s5 + $0x78] sm:$0xff] }
 0x239   :  { %1147 = vperm.xlu1 %2299, %v2924_v12   ;;  %1151 = vperm.xlu0 %2298, %v2930_v13  }
 0x23a   :  { %984 = vmatmul.mubr.bf16.vlgmr.msra.gmra.mrb[48].mxu0 %v2758_v49 }
 0x23b   :  { %1267 = vmatprep.mubr.bf16.mxu0 %v2366_v2 }
 0x23d   :  { %1155 = vperm.xlu1 %2299, %v2940_v4   ;;  %1159 = vperm.xlu0 %2298, %v2946_v18  }
 0x2d2   :  { %v1026_v32 = vpop.f32.mrb[48].mxu1 }
 0x2d3   :  { %v1027_v34 = vadd.f32 %v1026_v32, %v2797_v63  ;;  %v2211_v41 = vpop.f32.mrb[49].mxu1 }
 0x2d4   :  { %v1029_v44 = vpop.f32.mrb[50].mxu1 }
 0x2d5   :  { %v1034_v37 = vmul.f32 %v1027_v34, %v1027_v34  ;;  %v2212_v5 = vpop.f32.mrb[51].mxu1  ;;  %v1070_v22 = vrot.slane %v1027_v34, 4 }
 0x2d7   :  { %v1040_v49 = vrot.slane %v1034_v37, 4 }
 0x2d9   :  { %v1046_v6 = vadd.f32 %v1040_v49, %v1034_v37 }
 0x2db   :  { %v1049_v45 = vadd.f32 1e-30, %v1046_v6 }
 0x2dd   :  { %2338 = vrsqrt.f32 %v1049_v45 }
 0x2e7   :  { %v2339_v26 = vpop.eup %2338 }
 0x2e8   :  { %v1055_v46 = vmul.f32 %v2339_v26, %v1046_v6 }
 0x2ea   :  { %2340 = vtanh.f32 %v1055_v46 }
 0x2f4   :  { %v2341_v16 = vpop.eup %2340 }
 0x2f5   :  { %v1061_v9 = vmul.f32 %v2341_v16, %v2339_v26 }
 0x2f7   :  { %v1064_v17 = vmul.f32 %v1061_v9, %v1027_v34  ;;  %v1076_v29 = vmul.f32 %v1070_v22, %v1061_v9  ;;  %v1089_v9 = vld [vmem:[%s3264_s1] sm:$0xff] }
 0x2f9   :  { %v1082_v33 = vrot.slane %v1076_v29, 4 }
 0x2fb   :  { %v1088_v11 = vsel %vm261_vm0, %v1064_v17, %v1082_v33 }
 0x2fc   :  { %v1094_v28 = vadd.f32 %v1091_v43, %v1088_v11 }
 0x2fe   :  { %v1097_v24 = vpack.c.bf16 %v1094_v28, %v1094_v28  ;;  %1998 = vst [vmem:[%s3265_s6 + $0x10] sm:$0xff] %v1094_v28 }
 0x300   :  { %2284 = vmatprep.subr.msk.bf16.mxu1 %vm261_vm0, %v1097_v24  ;;  %v1233_v53 = vsel %vm261_vm0, %v1097_v24, 0 }
 0x301   :  { %2214 = vmatpush3.bf16.msra.mxu1 %v1233_v53 }
 0x304   :  { %2216 = vmatmul.mubr.msk.bf16.vlgmr.msra.gmra.mrb[52].mxu1 %vm236_vm1, %v2836_v38 }
 0x305   :  { %2219 = vmatprep.mubr.msk.bf16.mxu1 %vm236_vm1, %v2841_v56 }
 0x30c   :  { %2220 = vmatmul.mubr.msk.bf16.gmra.mrb[56].mxu1 %vm236_vm1, %v2874_v30 }
 0x30d   :  { %v985_v61 = vpop.f32.mrb[48].mxu0  ;;  %2223 = vmatprep.mubr.msk.bf16.mxu1 %vm236_vm1, %v2879_v60 }
 0x30e   :  { %v986_v62 = vadd.f32 %v985_v61, %v2797_v63  ;;  %v987_v47 = vpop.f32.mrb[49].mxu0 }
 0x30f   :  { %v988_v0 = vadd.f32 %v987_v47, %v2797_v63  ;;  %v989_v39 = vpop.f32.mrb[50].mxu0 }
 0x310   :  { %v1032_v7 = vmul.f32 %v986_v62, %v986_v62  ;;  %v990_v23 = vpop.f32.mrb[51].mxu0  ;;  %v1068_v49 = vrot.slane %v986_v62, 4 }
 0x311   :  { %v1033_v10 = vmul.f32 %v988_v0, %v988_v0  ;;  %v1069_v45 = vrot.slane %v988_v0, 4 }
 0x312   :  { %v1038_v8 = vrot.slane %v1032_v7, 4 }
 0x313   :  { %v1039_v3 = vrot.slane %v1033_v10, 4 }
 0x314   :  { %v1044_v55 = vadd.f32 %v1038_v8, %v1032_v7  ;;  %2224 = vmatmul.mubr.msk.bf16.gmra.mrb[60].mxu1 %vm236_vm1, %v2914_v40 }
 0x315   :  { %v1045_v42 = vadd.f32 %v1039_v3, %v1033_v10  ;;  %2227 = vmatprep.mubr.msk.bf16.mxu1 %vm236_vm1, %v2919_v27 }
 0x316   :  { %v1047_v36 = vadd.f32 1e-30, %v1044_v55 }
 0x317   :  { %v1048_v14 = vadd.f32 1e-30, %v1045_v42 }
 0x318   :  { %2342 = vrsqrt.f32 %v1047_v36 }
 0x319   :  { %2344 = vrsqrt.f32 %v1048_v14 }
 0x31c   :  { %2228 = vmatmul.mubr.msk.bf16.gmra.mrb[64].mxu1 %vm236_vm1, %v2329_v19 }
 0x31d   :  { %1661 = vmatprep.mubr.bf16.mxu1 %v2366_v2 }
 0x322   :  { %v2343_v63 = vpop.eup %2342 }
 0x323   :  { %v2345_v32 = vpop.eup %2344  ;;  %v1053_v34 = vmul.f32 %v2343_v63, %v1044_v55 }
 0x324   :  { %v1054_v41 = vmul.f32 %v2345_v32, %v1045_v42 }
 0x325   :  { %2346 = vtanh.f32 %v1053_v34 }
 0x326   :  { %2348 = vtanh.f32 %v1054_v41 }
 0x32f   :  { %v2347_v44 = vpop.eup %2346 }
 0x330   :  { %v2349_v37 = vpop.eup %2348  ;;  %v1059_v5 = vmul.f32 %v2347_v44, %v2343_v63 }
 0x331   :  { %v1060_v6 = vmul.f32 %v2349_v37, %v2345_v32 }
 0x332   :  { %v1074_v26 = vmul.f32 %v1068_v49, %v1059_v5  ;;  %v1062_v22 = vmul.f32 %v1059_v5, %v986_v62 }
 0x333   :  { %v1075_v46 = vmul.f32 %v1069_v45, %v1060_v6  ;;  %v1063_v17 = vmul.f32 %v1060_v6, %v988_v0 }
 0x334   :  { %v1080_v16 = vrot.slane %v1074_v26, 4 }
 0x335   :  { %v1081_v29 = vrot.slane %v1075_v46, 4 }
 0x336   :  { %v1086_v33 = vsel %vm261_vm0, %v1062_v22, %v1080_v16 }
 0x337   :  { %v1087_v43 = vsel %vm261_vm0, %v1063_v17, %v1081_v29  ;;  %v1092_v11 = vadd.f32 %v1089_v9, %v1086_v33 }
 0x338   :  { %v1093_v28 = vadd.f32 %v1090_v48, %v1087_v43 }
 0x339   :  { %v1095_v24 = vpack.c.bf16 %v1092_v11, %v1092_v11  ;;  %1996 = vst [vmem:[%s3265_s6] sm:$0xff] %v1092_v11 }
 0x33a   :  { %v1096_v53 = vpack.c.bf16 %v1093_v28, %v1093_v28  ;;  %1997 = vst [vmem:[%s3265_s6 + $0x8] sm:$0xff] %v1093_v28 }
 0x33b   :  { %v1227_v61 = vsel %vm261_vm0, %v1095_v24, 0 }
 0x33c   :  { %2050 = vmatprep.subr.msk.bf16.mxu0 %vm261_vm0, %v1096_v53 }
 0x33d   :  { %1236 = vmatpush1.bf16.msra.mxu0 %v1227_v61 }
 0x340   :  { %2051 = vmatmul.mubr.msk.bf16.vlgmr.msra.gmra.mrb[52].mxu0 %vm236_vm1, %v2793_v20  ;;  %v2995_v20 = vld [vmem:[%s3262_s2 + $0x40] sm:$0xff]  }
 0x341   :  { %1277 = vmatprep.mubr.bf16.mxu0 %v2366_v2 }
 0x348   :  { %2052 = vmatmul.mubr.msk.bf16.gmra.mrb[56].mxu0 %vm236_vm1, %v2836_v38  ;;  %v2997_v38 = vpop.permute.xlu1 %1103 }
 0x349   :  { %1287 = vmatprep.mubr.bf16.mxu0 %v2366_v2 }
 0x350   :  { %2053 = vmatmul.mubr.msk.bf16.gmra.mrb[60].mxu0 %vm236_vm1, %v2841_v56  ;;  %v3000_v56 = vpop.permute.xlu0 %1099 }
 0x351   :  { %1297 = vmatprep.mubr.bf16.mxu0 %v2366_v2 }
 0x358   :  { %2054 = vmatmul.mubr.msk.bf16.gmra.mrb[64].mxu0 %vm236_vm1, %v2874_v30  ;;  %v3002_v30 = vpop.permute.xlu1 %1107 }
 0x359   :  { %1307 = vmatprep.mubr.bf16.mxu0 %v2366_v2 }
 0x35c   :  { %v3006_v62 = vpop.permute.xlu1 %1115 }
 0x360   :  { %2055 = vmatmul.mubr.msk.bf16.gmra.mrb[68].mxu0 %vm236_vm1, %v2879_v60  ;;  %v3004_v60 = vpop.permute.xlu0 %1111  ;;  %v3010_v0 = vpop.permute.xlu1 %1123 }
 0x361   :  { %1317 = vmatprep.mubr.bf16.mxu0 %v2366_v2 }
 0x364   :  { %v3008_v47 = vpop.permute.xlu0 %1119  ;;  %v3018_v14 = vpop.permute.xlu1 %1131 }
 0x368   :  { %2056 = vmatmul.mubr.msk.bf16.gmra.mrb[72].mxu0 %vm236_vm1, %v2914_v40  ;;  %v3012_v7 = vpop.permute.xlu0 %1127  ;;  %v3024_v45 = vpop.permute.xlu1 %1139 }
 0x369   :  { %1327 = vmatprep.mubr.bf16.mxu0 %v2366_v2 }
 0x36c   :  { %v3020_v32 = vpop.permute.xlu0 %1135  ;;  %v3030_v28 = vpop.permute.xlu1 %1147 }
 0x370   :  { %2057 = vmatmul.mubr.msk.bf16.gmra.mrb[76].mxu0 %vm236_vm1, %v2919_v27  ;;  %v3028_v17 = vpop.permute.xlu0 %1143 }
 0x371   :  { %1337 = vmatprep.mubr.bf16.mxu0 %v2366_v2 }
 0x378   :  { %2058 = vmatmul.mubr.msk.bf16.gmra.mrb[80].mxu0 %vm236_vm1, %v2329_v19 }
 0x379   :  { %2247 = vmatprep.mubr.bf16.mxu0 %v2995_v20 }
 0x3d7   :  { %v2217_v39 = vpop.f32.mrb[52].mxu1 }
 0x3d8   :  { %v1382_v23 = vpop.f32.mrb[53].mxu1  ;;  %v1391_v10 = vadd.f32 %v2217_v39, %v3002_v30 }
 0x3d9   :  { %v1383_v40 = vadd.f32 %v1382_v23, %v3000_v56  ;;  %v2218_v8 = vpop.f32.mrb[54].mxu1  ;;  %v3034_v23 = vpop.permute.xlu0 %1151 }
 0x3da   :  { %v1385_v27 = vpop.f32.mrb[55].mxu1  ;;  %v1453_v3 = vmax.f32 %v1391_v10, 0.0  ;;  %v1394_v55 = vadd.f32 %v2218_v8, %v3004_v60 }
 0x3db   :  { %v1447_v42 = vmax.f32 %v1383_v40, 0.0  ;;  %v1386_v36 = vadd.f32 %v1385_v27, %v2997_v38 }
 0x3dc   :  { %v1456_v19 = vmax.f32 %v1394_v55, 0.0 }
 0x3dd   :  { %v1450_v63 = vmax.f32 %v1386_v36, 0.0  ;;  %v3038_v36 = vpop.permute.xlu1 %1155 }
 0x3de   :  { %v1498_v34 = vpack.c.bf16 %v1456_v19, %v1453_v3 }
 0x3df   :  { %v1495_v41 = vpack.c.bf16 %v1450_v63, %v1447_v42  ;;  %v2221_v44 = vpop.f32.mrb[56].mxu1 }
 0x3e0   :  { %v1398_v37 = vpop.f32.mrb[57].mxu1  ;;  %v1407_v5 = vadd.f32 %v2221_v44, %v3010_v0 }
 0x3e1   :  { %v2222_v49 = vpop.f32.mrb[58].mxu1  ;;  %2231 = vmatprep.subr.bf16.mxu0 %v1495_v41  ;;  %v1399_v6 = vadd.f32 %v1398_v37, %v3006_v62 }
 0x3e2   :  { %v1401_v26 = vpop.f32.mrb[59].mxu1  ;;  %2232 = vmatpush3.bf16.msra.mxu0 %v1495_v41  ;;  %v1465_v46 = vmax.f32 %v1407_v5, 0.0  ;;  %v1410_v22 = vadd.f32 %v2222_v49, %v3012_v7  ;;  %v3040_v41 = vpop.permute.xlu0 %1159 }
 0x3e3   :  { %v1459_v16 = vmax.f32 %v1399_v6, 0.0  ;;  %v1402_v9 = vadd.f32 %v1401_v26, %v3008_v47  ;;  %2233 = vmatprep.subr.bf16.mxu0 %v1498_v34 }
 0x3e4   :  { %v1468_v29 = vmax.f32 %v1410_v22, 0.0 }
 0x3e5   :  { %v1462_v48 = vmax.f32 %v1402_v9, 0.0 }
 0x3e6   :  { %2234 = vmatpush3.bf16.msra.mxu0 %v1498_v34  ;;  %v1504_v33 = vpack.c.bf16 %v1468_v29, %v1465_v46 }
 0x3e7   :  { %v1501_v43 = vpack.c.bf16 %v1462_v48, %v1459_v16  ;;  %v2225_v11 = vpop.f32.mrb[60].mxu1 }
 0x3e8   :  { %v1414_v24 = vpop.f32.mrb[61].mxu1  ;;  %v1423_v53 = vadd.f32 %v2225_v11, %v3024_v45  ;;  %v3054_v11 = vld [vmem:[%s3262_s2 + $0x50] sm:$0xff]  }
 0x3e9   :  { %v2226_v61 = vpop.f32.mrb[62].mxu1  ;;  %2235 = vmatprep.subr.bf16.mxu0 %v1501_v43  ;;  %v1415_v39 = vadd.f32 %v1414_v24, %v3018_v14  ;;  %v3061_v24 = vld [vmem:[%s3262_s2 + $0x58] sm:$0xff]  }
 0x3ea   :  { %v1417_v10 = vpop.f32.mrb[63].mxu1  ;;  %2236 = vmatpush3.bf16.msra.mxu0 %v1501_v43  ;;  %v1477_v40 = vmax.f32 %v1423_v53, 0.0  ;;  %v1426_v8 = vadd.f32 %v2226_v61, %v3028_v17  ;;  %v3049_v43 = vld [vmem:[%s3262_s2 + $0x48] sm:$0xff]   ;;  %v3066_v53 = vld [vmem:[%s3262_s2 + $0x60] sm:$0xff]   ;;  %v2372_v61 = vmov 4  }
 0x3eb   :  { %v1471_v27 = vmax.f32 %v1415_v39, 0.0  ;;  %v1418_v3 = vadd.f32 %v1417_v10, %v3020_v32  ;;  %2237 = vmatprep.subr.bf16.mxu0 %v1504_v33  ;;  %2300 = vset.pattern.permute.xlu1 %v2372_v61  ;;  %v3075_v39 = vld [vmem:[%s3262_s2 + $0x68] sm:$0xff]   ;;  %v3080_v10 = vld [vmem:[%s3262_s2 + $0x70] sm:$0xff]  }
 0x3ec   :  { %v1480_v55 = vmax.f32 %v1426_v8, 0.0  ;;  %1518 = vperm.xlu1 %2300, %v2812_v51   ;;  %2301 = vset.pattern.permute.xlu0 %v2372_v61 }
 0x3ed   :  { %v1474_v42 = vmax.f32 %v1418_v3, 0.0  ;;  %1522 = vperm.xlu0 %2301, %v2806_v50  }
 0x3ee   :  { %2238 = vmatpush3.bf16.msra.mxu0 %v1504_v33  ;;  %v1510_v19 = vpack.c.bf16 %v1480_v55, %v1477_v40 }
 0x3ef   :  { %v1507_v63 = vpack.c.bf16 %v1474_v42, %v1471_v27  ;;  %v2229_v34 = vpop.f32.mrb[64].mxu1 }
 0x3f0   :  { %v1430_v44 = vpop.f32.mrb[65].mxu1  ;;  %v1439_v37 = vadd.f32 %v2229_v34, %v3038_v36  ;;  %1526 = vperm.xlu1 %2300, %v2819_v54  }
 0x3f1   :  { %v2230_v5 = vpop.f32.mrb[66].mxu1  ;;  %2239 = vmatprep.subr.bf16.mxu0 %v1507_v63  ;;  %v1431_v49 = vadd.f32 %v1430_v44, %v3030_v28  ;;  %1534 = vperm.xlu0 %2301, %v2846_v58   ;;  %v3094_v58 = vld [vmem:[%s3262_s2 + $0x78] sm:$0xff]  }
 0x3f2   :  { %v1433_v6 = vpop.f32.mrb[67].mxu1  ;;  %2240 = vmatpush3.bf16.msra.mxu0 %v1507_v63  ;;  %v1489_v26 = vmax.f32 %v1439_v37, 0.0  ;;  %v1442_v46 = vadd.f32 %v2230_v5, %v3040_v41 }
 0x3f3   :  { %v1483_v22 = vmax.f32 %v1431_v49, 0.0  ;;  %v1434_v16 = vadd.f32 %v1433_v6, %v3034_v23  ;;  %2241 = vmatprep.subr.bf16.mxu0 %v1510_v19 }
 0x3f4   :  { %v1492_v9 = vmax.f32 %v1442_v46, 0.0  ;;  %1530 = vperm.xlu1 %2300, %v2825_v52  }
 0x3f5   :  { %v1486_v29 = vmax.f32 %v1434_v16, 0.0  ;;  %1542 = vperm.xlu0 %2301, %v2862_v59  }
 0x3f6   :  { %2242 = vmatpush3.bf16.msra.mxu0 %v1510_v19  ;;  %v1516_v48 = vpack.c.bf16 %v1492_v9, %v1489_v26 }
 0x3f7   :  { %v1513_v33 = vpack.c.bf16 %v1486_v29, %v1483_v22 }
 0x3f8   :  { %1538 = vperm.xlu1 %2300, %v2852_v57  }
 0x3f9   :  { %2243 = vmatprep.subr.bf16.mxu0 %v1513_v33  ;;  %1550 = vperm.xlu0 %2301, %v2884_v25  }
 0x3fa   :  { %2244 = vmatpush3.bf16.msra.mxu0 %v1513_v33 }
 0x3fb   :  { %2245 = vmatprep.subr.bf16.mxu0 %v1516_v48 }
 0x3fc   :  { %1546 = vperm.xlu1 %2300, %v2868_v35  }
 0x3fd   :  { %1558 = vperm.xlu0 %2301, %v2901_v1  }
 0x3fe   :  { %2246 = vmatpush3.bf16.msra.mxu0 %v1516_v48 }
 0x400   :  { %1554 = vperm.xlu1 %2300, %v2890_v21  }
 0x401   :  { %2248 = vmatmul.mubr.bf16.vlgmr.msra.gmra.mrb[84].mxu0 %v3049_v43  ;;  %1566 = vperm.xlu0 %2301, %v2924_v12  }
 0x402   :  { %2251 = vmatprep.mubr.bf16.mxu0 %v3054_v11 }
 0x404   :  { %1562 = vperm.xlu1 %2300, %v2908_v15  }
 0x405   :  { %1574 = vperm.xlu0 %2301, %v2940_v4  }
 0x408   :  { %1570 = vperm.xlu1 %2300, %v2930_v13  }
 0x409   :  { %2252 = vmatmul.mubr.bf16.gmra.mrb[88].mxu0 %v3061_v24 }
 0x40a   :  { %2255 = vmatprep.mubr.bf16.mxu0 %v3066_v53 }
 0x40c   :  { %1578 = vperm.xlu1 %2300, %v2946_v18  }
 0x411   :  { %2256 = vmatmul.mubr.bf16.gmra.mrb[92].mxu0 %v3075_v39 }
 0x412   :  { %2259 = vmatprep.mubr.bf16.mxu0 %v3080_v10 }
 0x413   :  { %v1269_v40 = vpop.f32.mrb[52].mxu0 }
 0x414   :  { %v1271_v50 = vpop.f32.mrb[53].mxu0  ;;  %v1270_v8 = vadd.f32 %v1269_v40, %v3000_v56 }
 0x415   :  { %v1273_v27 = vpop.f32.mrb[54].mxu0  ;;  %v1272_v3 = vadd.f32 %v1271_v50, %v3000_v56 }
 0x416   :  { %v1274_v55 = vadd.f32 %v1273_v27, %v2997_v38  ;;  %v1275_v54 = vpop.f32.mrb[55].mxu0  ;;  %v1445_v63 = vmax.f32 %v1270_v8, 0.0 }
 0x417   :  { %v1276_v42 = vadd.f32 %v1275_v54, %v2997_v38  ;;  %v1446_v52 = vmax.f32 %v1272_v3, 0.0 }
 0x418   :  { %v1448_v19 = vmax.f32 %v1274_v55, 0.0 }
 0x419   :  { %v1449_v34 = vmax.f32 %v1276_v42, 0.0  ;;  %2260 = vmatmul.mubr.bf16.gmra.mrb[96].mxu0 %v3094_v58 }
 0x41a   :  { %v1493_v56 = vpack.c.bf16 %v1448_v19, %v1445_v63  ;;  %1947 = vmatprep.mubr.bf16.mxu0 %v2366_v2 }
 0x41b   :  { %v1494_v59 = vpack.c.bf16 %v1449_v34, %v1446_v52  ;;  %v1279_v44 = vpop.f32.mrb[56].mxu0 }
 0x41c   :  { %v1280_v37 = vadd.f32 %v1279_v44, %v3002_v30  ;;  %v1281_v5 = vpop.f32.mrb[57].mxu0 }
 0x41d   :  { %v1282_v38 = vadd.f32 %v1281_v5, %v3002_v30  ;;  %v1283_v49 = vpop.f32.mrb[58].mxu0  ;;  %1629 = vmatprep.subr.bf16.mxu1 %v1494_v59 }
 0x41e   :  { %v1284_v57 = vadd.f32 %v1283_v49, %v3004_v60  ;;  %v1285_v25 = vpop.f32.mrb[59].mxu0  ;;  %1630 = vmatpush1.bf16.msra.mxu1 %v1493_v56  ;;  %v1451_v26 = vmax.f32 %v1280_v37, 0.0 }
 0x41f   :  { %v1286_v6 = vadd.f32 %v1285_v25, %v3004_v60  ;;  %v1452_v22 = vmax.f32 %v1282_v38, 0.0 }
 0x420   :  { %v1454_v46 = vmax.f32 %v1284_v57, 0.0 }
 0x421   :  { %v1455_v16 = vmax.f32 %v1286_v6, 0.0 }
 0x422   :  { %v1496_v35 = vpack.c.bf16 %v1454_v46, %v1451_v26 }
 0x423   :  { %v1497_v30 = vpack.c.bf16 %v1455_v16, %v1452_v22  ;;  %v1289_v9 = vpop.f32.mrb[60].mxu0 }
 0x424   :  { %v1290_v29 = vadd.f32 %v1289_v9, %v3006_v62  ;;  %v1291_v1 = vpop.f32.mrb[61].mxu0 }
 0x425   :  { %v1292_v48 = vadd.f32 %v1291_v1, %v3006_v62  ;;  %v1293_v33 = vpop.f32.mrb[62].mxu0  ;;  %1631 = vmatprep.subr.bf16.mxu1 %v1497_v30 }
 0x426   :  { %v1294_v21 = vadd.f32 %v1293_v33, %v3008_v47  ;;  %v1295_v60 = vpop.f32.mrb[63].mxu0  ;;  %1632 = vmatpush1.bf16.msra.mxu1 %v1496_v35  ;;  %v1457_v61 = vmax.f32 %v1290_v29, 0.0 }
 0x427   :  { %v1296_v12 = vadd.f32 %v1295_v60, %v3008_v47  ;;  %v1458_v50 = vmax.f32 %v1292_v48, 0.0 }
 0x428   :  { %v1460_v40 = vmax.f32 %v1294_v21, 0.0 }
 0x429   :  { %v1461_v8 = vmax.f32 %v1296_v12, 0.0 }
 0x42a   :  { %v1499_v27 = vpack.c.bf16 %v1460_v40, %v1457_v61 }
 0x42b   :  { %v1500_v15 = vpack.c.bf16 %v1461_v8, %v1458_v50  ;;  %v1299_v3 = vpop.f32.mrb[64].mxu0 }
 0x42c   :  { %v1300_v62 = vadd.f32 %v1299_v3, %v3010_v0  ;;  %v1301_v55 = vpop.f32.mrb[65].mxu0 }
 0x42d   :  { %v1302_v4 = vadd.f32 %v1301_v55, %v3010_v0  ;;  %v1303_v54 = vpop.f32.mrb[66].mxu0  ;;  %1633 = vmatprep.subr.bf16.mxu1 %v1500_v15 }
 0x42e   :  { %v1304_v47 = vadd.f32 %v1303_v54, %v3012_v7  ;;  %v1305_v42 = vpop.f32.mrb[67].mxu0  ;;  %1634 = vmatpush1.bf16.msra.mxu1 %v1499_v27  ;;  %v1463_v19 = vmax.f32 %v1300_v62, 0.0 }
 0x42f   :  { %v1306_v13 = vadd.f32 %v1305_v42, %v3012_v7  ;;  %v1464_v52 = vmax.f32 %v1302_v4, 0.0 }
 0x430   :  { %v1466_v63 = vmax.f32 %v1304_v47, 0.0 }
 0x431   :  { %v1467_v34 = vmax.f32 %v1306_v13, 0.0 }
 0x432   :  { %v1502_v56 = vpack.c.bf16 %v1466_v63, %v1463_v19 }
 0x433   :  { %v1503_v59 = vpack.c.bf16 %v1467_v34, %v1464_v52  ;;  %v1309_v44 = vpop.f32.mrb[68].mxu0 }
 0x434   :  { %v1310_v37 = vadd.f32 %v1309_v44, %v3018_v14  ;;  %v1311_v18 = vpop.f32.mrb[69].mxu0 }
 0x435   :  { %v1312_v0 = vadd.f32 %v1311_v18, %v3018_v14  ;;  %v1313_v5 = vpop.f32.mrb[70].mxu0  ;;  %1635 = vmatprep.subr.bf16.mxu1 %v1503_v59 }
 0x436   :  { %v1314_v38 = vadd.f32 %v1313_v5, %v3020_v32  ;;  %v1315_v49 = vpop.f32.mrb[71].mxu0  ;;  %1636 = vmatpush1.bf16.msra.mxu1 %v1502_v56  ;;  %v1469_v57 = vmax.f32 %v1310_v37, 0.0 }
 0x437   :  { %v1316_v7 = vadd.f32 %v1315_v49, %v3020_v32  ;;  %v1470_v6 = vmax.f32 %v1312_v0, 0.0 }
 0x438   :  { %v1472_v25 = vmax.f32 %v1314_v38, 0.0 }
 0x439   :  { %v1473_v26 = vmax.f32 %v1316_v7, 0.0 }
 0x43a   :  { %v1505_v46 = vpack.c.bf16 %v1472_v25, %v1469_v57 }
 0x43b   :  { %v1506_v22 = vpack.c.bf16 %v1473_v26, %v1470_v6  ;;  %v1319_v16 = vpop.f32.mrb[72].mxu0 }
 0x43c   :  { %v1320_v35 = vadd.f32 %v1319_v16, %v3024_v45  ;;  %v1321_v30 = vpop.f32.mrb[73].mxu0 }
 0x43d   :  { %v1322_v14 = vadd.f32 %v1321_v30, %v3024_v45  ;;  %v1323_v9 = vpop.f32.mrb[74].mxu0  ;;  %1637 = vmatprep.subr.bf16.mxu1 %v1506_v22 }
 0x43e   :  { %v1324_v29 = vadd.f32 %v1323_v9, %v3028_v17  ;;  %v1325_v1 = vpop.f32.mrb[75].mxu0  ;;  %1638 = vmatpush1.bf16.msra.mxu1 %v1505_v46  ;;  %v1475_v48 = vmax.f32 %v1320_v35, 0.0 }
 0x43f   :  { %v1326_v32 = vadd.f32 %v1325_v1, %v3028_v17  ;;  %v1476_v21 = vmax.f32 %v1322_v14, 0.0 }
 0x440   :  { %v1478_v33 = vmax.f32 %v1324_v29, 0.0 }
 0x441   :  { %v1479_v60 = vmax.f32 %v1326_v32, 0.0 }
 0x442   :  { %v1508_v12 = vpack.c.bf16 %v1478_v33, %v1475_v48 }
 0x443   :  { %v1509_v61 = vpack.c.bf16 %v1479_v60, %v1476_v21  ;;  %v1329_v40 = vpop.f32.mrb[76].mxu0 }
 0x444   :  { %v1330_v50 = vadd.f32 %v1329_v40, %v3030_v28  ;;  %v1331_v8 = vpop.f32.mrb[77].mxu0 }
 0x445   :  { %v1332_v45 = vadd.f32 %v1331_v8, %v3030_v28  ;;  %v1333_v27 = vpop.f32.mrb[78].mxu0  ;;  %1639 = vmatprep.subr.bf16.mxu1 %v1509_v61 }
 0x446   :  { %v1334_v15 = vadd.f32 %v1333_v27, %v3034_v23  ;;  %v1335_v3 = vpop.f32.mrb[79].mxu0  ;;  %1640 = vmatpush1.bf16.msra.mxu1 %v1508_v12  ;;  %v1481_v62 = vmax.f32 %v1330_v50, 0.0 }
 0x447   :  { %v1336_v17 = vadd.f32 %v1335_v3, %v3034_v23  ;;  %v1482_v4 = vmax.f32 %v1332_v45, 0.0 }
 0x448   :  { %v1484_v55 = vmax.f32 %v1334_v15, 0.0 }
 0x449   :  { %v1485_v54 = vmax.f32 %v1336_v17, 0.0 }
 0x44a   :  { %v1511_v47 = vpack.c.bf16 %v1484_v55, %v1481_v62 }
 0x44b   :  { %v1512_v42 = vpack.c.bf16 %v1485_v54, %v1482_v4  ;;  %v1339_v13 = vpop.f32.mrb[80].mxu0 }
 0x44c   :  { %v1340_v19 = vadd.f32 %v1339_v13, %v3038_v36  ;;  %v1341_v63 = vpop.f32.mrb[81].mxu0 }
 0x44d   :  { %v1342_v28 = vadd.f32 %v1341_v63, %v3038_v36  ;;  %v1343_v52 = vpop.f32.mrb[82].mxu0  ;;  %1641 = vmatprep.subr.bf16.mxu1 %v1512_v42 }
 0x44e   :  { %v1344_v34 = vadd.f32 %v1343_v52, %v3040_v41  ;;  %v1345_v56 = vpop.f32.mrb[83].mxu0  ;;  %1642 = vmatpush1.bf16.msra.mxu1 %v1511_v47  ;;  %v1487_v59 = vmax.f32 %v1340_v19, 0.0 }
 0x44f   :  { %v1346_v23 = vadd.f32 %v1345_v56, %v3040_v41  ;;  %v1488_v37 = vmax.f32 %v1342_v28, 0.0 }
 0x450   :  { %v1490_v44 = vmax.f32 %v1344_v34, 0.0 }
 0x451   :  { %v1491_v18 = vmax.f32 %v1346_v23, 0.0 }
 0x452   :  { %v1514_v0 = vpack.c.bf16 %v1490_v44, %v1487_v59 }
 0x453   :  { %v1515_v5 = vpack.c.bf16 %v1491_v18, %v1488_v37 }
 0x455   :  { %1643 = vmatprep.subr.bf16.mxu1 %v1515_v5 }
 0x456   :  { %1644 = vmatpush1.bf16.msra.mxu1 %v1514_v0 }
 0x457   :  { %2263 = vmatprep.subr.bf16.mxu1 %v2368_v31 }
 0x459   :  { %1662 = vmatmul.mubr.bf16.vlgmr.msra.gmra.mrb[68].mxu1 %v2995_v20 }
 0x45a   :  { %1671 = vmatprep.mubr.bf16.mxu1 %v2366_v2 }
 0x461   :  { %1672 = vmatmul.mubr.bf16.gmra.mrb[72].mxu1 %v3049_v43 }
 0x462   :  { %1681 = vmatprep.mubr.bf16.mxu1 %v2366_v2 }
 0x469   :  { %1682 = vmatmul.mubr.bf16.gmra.mrb[76].mxu1 %v3054_v11 }
 0x46a   :  { %1691 = vmatprep.mubr.bf16.mxu1 %v2366_v2 }
 0x46b   :  { %v3155_v20 = vpop.permute.xlu1 %1518 }
 0x46c   :  { %v3159_v41 = vpop.permute.xlu0 %1522 }
 0x46f   :  { %v3157_v36 = vpop.permute.xlu1 %1526 }
 0x470   :  { %v3163_v11 = vpop.permute.xlu0 %1534 }
 0x471   :  { %1692 = vmatmul.mubr.bf16.gmra.mrb[80].mxu1 %v3061_v24 }
 0x472   :  { %1701 = vmatprep.mubr.bf16.mxu1 %v2366_v2 }
 0x473   :  { %v3161_v43 = vpop.permute.xlu1 %1530 }
 0x477   :  { %v3165_v24 = vpop.permute.xlu1 %1538 }
 0x479   :  { %1702 = vmatmul.mubr.bf16.gmra.mrb[84].mxu1 %v3066_v53  ;;  %v3167_v53 = vpop.permute.xlu0 %1542 }
 0x47a   :  { %1711 = vmatprep.mubr.bf16.mxu1 %v2366_v2 }
 0x47d   :  { %v3175_v46 = vpop.permute.xlu0 %1550 }
 0x481   :  { %1712 = vmatmul.mubr.bf16.gmra.mrb[88].mxu1 %v3075_v39  ;;  %v3169_v39 = vpop.permute.xlu1 %1546  ;;  %v3181_v33 = vpop.permute.xlu0 %1558 }
 0x482   :  { %1721 = vmatprep.mubr.bf16.mxu1 %v2366_v2 }
 0x485   :  { %v3177_v35 = vpop.permute.xlu1 %1554  ;;  %v3189_v17 = vpop.permute.xlu0 %1566 }
 0x489   :  { %1722 = vmatmul.mubr.bf16.gmra.mrb[92].mxu1 %v3080_v10  ;;  %v3186_v50 = vpop.permute.xlu1 %1562  ;;  %v3198_v56 = vpop.permute.xlu0 %1574 }
 0x48a   :  { %1731 = vmatprep.mubr.bf16.mxu1 %v2366_v2 }
 0x48d   :  { %v3193_v47 = vpop.permute.xlu1 %1570 }
 0x491   :  { %1732 = vmatmul.mubr.bf16.gmra.mrb[96].mxu1 %v3094_v58  ;;  %v3201_v37 = vpop.permute.xlu1 %1578 }
 0x492   :  { %2279 = vmatprep.mubr.msk.bf16.mxu1 %vm2369_vm2, %v2368_v31 }
 0x4d4   :  { %v2249_v2 = vpop.f32.mrb[84].mxu0 }
 0x4d5   :  { %v1776_v10 = vpop.f32.mrb[85].mxu0  ;;  %v1785_v58 = vadd.f32 %v2249_v2, %v3157_v36 }
 0x4d6   :  { %v1777_v38 = vadd.f32 %v1776_v10, %v3155_v20  ;;  %v2250_v49 = vpop.f32.mrb[86].mxu0 }
 0x4d7   :  { %v1847_v7 = vmax.f32 %v1785_v58, 0.0  ;;  %v1779_v57 = vpop.f32.mrb[87].mxu0  ;;  %v1788_v25 = vadd.f32 %v2250_v49, %v3161_v43 }
 0x4d8   :  { %v1841_v6 = vmax.f32 %v1777_v38, 0.0  ;;  %v1780_v26 = vadd.f32 %v1779_v57, %v3159_v41 }
 0x4d9   :  { %v1850_v22 = vmax.f32 %v1788_v25, 0.0 }
 0x4da   :  { %v1844_v16 = vmax.f32 %v1780_v26, 0.0 }
 0x4db   :  { %v1892_v30 = vpack.c.bf16 %v1850_v22, %v1847_v7 }
 0x4dc   :  { %v1889_v14 = vpack.c.bf16 %v1844_v16, %v1841_v6  ;;  %v2253_v9 = vpop.f32.mrb[88].mxu0  ;;  %v2373_v6 = vmov 5   ;;  %v3214_v16 = vld [vmem:[%s3262_s2 + $0x84] sm:$0xf] }
 0x4dd   :  { %v1792_v29 = vpop.f32.mrb[89].mxu0  ;;  %v1801_v1 = vadd.f32 %v2253_v9, %v3167_v53  ;;  %2302 = vset.pattern.permute.xlu0 %v2373_v6 }
 0x4de   :  { %v2254_v32 = vpop.f32.mrb[90].mxu0  ;;  %2264 = vmatpush3.bf16.msra.mxu1 %v1889_v14  ;;  %v1793_v48 = vadd.f32 %v1792_v29, %v3163_v11  ;;  %1912 = vperm.xlu0 %2302, %v2812_v51  }
 0x4df   :  { %v1795_v21 = vpop.f32.mrb[91].mxu0  ;;  %2265 = vmatprep.subr.bf16.mxu1 %v2368_v31  ;;  %v1804_v60 = vadd.f32 %v2254_v32, %v3169_v39  ;;  %v1859_v12 = vmax.f32 %v1801_v1, 0.0 }
 0x4e0   :  { %v1853_v61 = vmax.f32 %v1793_v48, 0.0  ;;  %v1796_v40 = vadd.f32 %v1795_v21, %v3165_v24 }
 0x4e1   :  { %v1862_v8 = vmax.f32 %v1804_v60, 0.0 }
 0x4e2   :  { %v1856_v45 = vmax.f32 %v1796_v40, 0.0  ;;  %2266 = vmatpush3.bf16.msra.mxu1 %v1892_v30 }
 0x4e3   :  { %v1898_v27 = vpack.c.bf16 %v1862_v8, %v1859_v12  ;;  %2267 = vmatprep.subr.bf16.mxu1 %v2368_v31 }
 0x4e4   :  { %v1895_v15 = vpack.c.bf16 %v1856_v45, %v1853_v61  ;;  %v2257_v3 = vpop.f32.mrb[92].mxu0 }
 0x4e5   :  { %v1808_v62 = vpop.f32.mrb[93].mxu0  ;;  %v1817_v55 = vadd.f32 %v2257_v3, %v3181_v33 }
 0x4e6   :  { %v2258_v4 = vpop.f32.mrb[94].mxu0  ;;  %2268 = vmatpush3.bf16.msra.mxu1 %v1895_v15  ;;  %v1809_v54 = vadd.f32 %v1808_v62, %v3175_v46 }
 0x4e7   :  { %v1811_v42 = vpop.f32.mrb[95].mxu0  ;;  %2269 = vmatprep.subr.bf16.mxu1 %v2368_v31  ;;  %v1820_v13 = vadd.f32 %v2258_v4, %v3186_v50  ;;  %v1871_v19 = vmax.f32 %v1817_v55, 0.0 }
 0x4e8   :  { %v1865_v63 = vmax.f32 %v1809_v54, 0.0  ;;  %v1812_v28 = vadd.f32 %v1811_v42, %v3177_v35 }
 0x4e9   :  { %v1874_v52 = vmax.f32 %v1820_v13, 0.0 }
 0x4ea   :  { %v1868_v34 = vmax.f32 %v1812_v28, 0.0  ;;  %2270 = vmatpush3.bf16.msra.mxu1 %v1898_v27 }
 0x4eb   :  { %v1904_v23 = vpack.c.bf16 %v1874_v52, %v1871_v19  ;;  %2271 = vmatprep.subr.bf16.mxu1 %v2368_v31 }
 0x4ec   :  { %v1901_v59 = vpack.c.bf16 %v1868_v34, %v1865_v63  ;;  %v2261_v44 = vpop.f32.mrb[96].mxu0 }
 0x4ed   :  { %v1824_v18 = vpop.f32.mrb[97].mxu0  ;;  %v1833_v0 = vadd.f32 %v2261_v44, %v3198_v56 }
 0x4ee   :  { %v2262_v5 = vpop.f32.mrb[98].mxu0  ;;  %2272 = vmatpush3.bf16.msra.mxu1 %v1901_v59  ;;  %v1825_v2 = vadd.f32 %v1824_v18, %v3189_v17 }
 0x4ef   :  { %v1827_v10 = vpop.f32.mrb[99].mxu0  ;;  %2273 = vmatprep.subr.bf16.mxu1 %v2368_v31  ;;  %v1836_v58 = vadd.f32 %v2262_v5, %v3201_v37  ;;  %v1883_v38 = vmax.f32 %v1833_v0, 0.0 }
 0x4f0   :  { %v1877_v49 = vmax.f32 %v1825_v2, 0.0  ;;  %v1828_v7 = vadd.f32 %v1827_v10, %v3193_v47 }
 0x4f1   :  { %v1886_v57 = vmax.f32 %v1836_v58, 0.0 }
 0x4f2   :  { %v1880_v25 = vmax.f32 %v1828_v7, 0.0  ;;  %2274 = vmatpush3.bf16.msra.mxu1 %v1904_v23 }
 0x4f3   :  { %v1910_v26 = vpack.c.bf16 %v1886_v57, %v1883_v38  ;;  %2275 = vmatprep.subr.bf16.mxu1 %v2368_v31 }
 0x4f4   :  { %v1907_v22 = vpack.c.bf16 %v1880_v25, %v1877_v49 }
 0x4f6   :  { %2276 = vmatpush3.bf16.msra.mxu1 %v1907_v22 }
 0x4f7   :  { %2277 = vmatprep.subr.bf16.mxu1 %v2368_v31 }
 0x4fa   :  { %2278 = vmatpush3.bf16.msra.mxu1 %v1910_v26 }
 0x4fd   :  { %2280 = vmatmul.mubr.bf16.vlgmr.msra.gmra.mrb[100].mxu1 %v3214_v16 }
 0x52c   :  { %v1663_v30 = vpop.f32.mrb[68].mxu1 }
 0x52d   :  { %v1664_v14 = vadd.f32 %v1663_v30, %v3155_v20  ;;  %v1665_v9 = vpop.f32.mrb[69].mxu1 }
 0x52e   :  { %v1666_v29 = vadd.f32 %v1665_v9, %v3155_v20  ;;  %v1667_v1 = vpop.f32.mrb[70].mxu1 }
 0x52f   :  { %v1668_v51 = vadd.f32 %v1667_v1, %v3159_v41  ;;  %v1669_v32 = vpop.f32.mrb[71].mxu1  ;;  %v1839_v48 = vmax.f32 %v1664_v14, 0.0 }
 0x530   :  { %v1670_v31 = vadd.f32 %v1669_v32, %v3159_v41  ;;  %v1840_v60 = vmax.f32 %v1666_v29, 0.0 }
 0x531   :  { %v1842_v21 = vmax.f32 %v1668_v51, 0.0 }
 0x532   :  { %v1843_v12 = vmax.f32 %v1670_v31, 0.0 }
 0x533   :  { %v1887_v61 = vpack.c.bf16 %v1842_v21, %v1839_v48 }
 0x534   :  { %v1888_v40 = vpack.c.bf16 %v1843_v12, %v1840_v60  ;;  %v1673_v8 = vpop.f32.mrb[72].mxu1 }
 0x535   :  { %v1674_v45 = vadd.f32 %v1673_v8, %v3157_v36  ;;  %v1675_v27 = vpop.f32.mrb[73].mxu1 }
 0x536   :  { %v1676_v15 = vadd.f32 %v1675_v27, %v3157_v36  ;;  %v1677_v3 = vpop.f32.mrb[74].mxu1  ;;  %1915 = vmatprep.subr.bf16.mxu0 %v1888_v40 }
 0x537   :  { %v1678_v20 = vadd.f32 %v1677_v3, %v3161_v43  ;;  %v1679_v62 = vpop.f32.mrb[75].mxu1  ;;  %1916 = vmatpush1.bf16.msra.mxu0 %v1887_v61  ;;  %v1845_v55 = vmax.f32 %v1674_v45, 0.0 }
 0x538   :  { %v1680_v41 = vadd.f32 %v1679_v62, %v3161_v43  ;;  %v1846_v54 = vmax.f32 %v1676_v15, 0.0 }
 0x539   :  { %v1848_v4 = vmax.f32 %v1678_v20, 0.0 }
 0x53a   :  { %v1849_v42 = vmax.f32 %v1680_v41, 0.0 }
 0x53b   :  { %v1890_v13 = vpack.c.bf16 %v1848_v4, %v1845_v55 }
 0x53c   :  { %v1891_v19 = vpack.c.bf16 %v1849_v42, %v1846_v54  ;;  %v1683_v63 = vpop.f32.mrb[76].mxu1 }
 0x53d   :  { %v1684_v28 = vadd.f32 %v1683_v63, %v3163_v11  ;;  %v1685_v52 = vpop.f32.mrb[77].mxu1 }
 0x53e   :  { %v1686_v36 = vadd.f32 %v1685_v52, %v3163_v11  ;;  %v1687_v34 = vpop.f32.mrb[78].mxu1  ;;  %1917 = vmatprep.subr.bf16.mxu0 %v1891_v19 }
 0x53f   :  { %v1688_v23 = vadd.f32 %v1687_v34, %v3165_v24  ;;  %v1689_v59 = vpop.f32.mrb[79].mxu1  ;;  %1918 = vmatpush1.bf16.msra.mxu0 %v1890_v13  ;;  %v1851_v44 = vmax.f32 %v1684_v28, 0.0 }
 0x540   :  { %v1690_v43 = vadd.f32 %v1689_v59, %v3165_v24  ;;  %v1852_v0 = vmax.f32 %v1686_v36, 0.0 }
 0x541   :  { %v1854_v18 = vmax.f32 %v1688_v23, 0.0 }
 0x542   :  { %v1855_v5 = vmax.f32 %v1690_v43, 0.0 }
 0x543   :  { %v1893_v2 = vpack.c.bf16 %v1854_v18, %v1851_v44 }
 0x544   :  { %v1894_v10 = vpack.c.bf16 %v1855_v5, %v1852_v0  ;;  %v1693_v58 = vpop.f32.mrb[80].mxu1 }
 0x545   :  { %v1694_v38 = vadd.f32 %v1693_v58, %v3167_v53  ;;  %v1695_v49 = vpop.f32.mrb[81].mxu1 }
 0x546   :  { %v1696_v11 = vadd.f32 %v1695_v49, %v3167_v53  ;;  %v1697_v7 = vpop.f32.mrb[82].mxu1  ;;  %1919 = vmatprep.subr.bf16.mxu0 %v1894_v10 }
 0x547   :  { %v1698_v57 = vadd.f32 %v1697_v7, %v3169_v39  ;;  %v1699_v25 = vpop.f32.mrb[83].mxu1  ;;  %1920 = vmatpush1.bf16.msra.mxu0 %v1893_v2  ;;  %v1857_v6 = vmax.f32 %v1694_v38, 0.0 }
 0x548   :  { %v1700_v24 = vadd.f32 %v1699_v25, %v3169_v39  ;;  %v1858_v22 = vmax.f32 %v1696_v11, 0.0 }
 0x549   :  { %v1860_v26 = vmax.f32 %v1698_v57, 0.0 }
 0x54a   :  { %v1861_v30 = vmax.f32 %v1700_v24, 0.0 }
 0x54b   :  { %v1896_v14 = vpack.c.bf16 %v1860_v26, %v1857_v6 }
 0x54c   :  { %v1897_v9 = vpack.c.bf16 %v1861_v30, %v1858_v22  ;;  %v1703_v29 = vpop.f32.mrb[84].mxu1 }
 0x54d   :  { %v1704_v1 = vadd.f32 %v1703_v29, %v3175_v46  ;;  %v1705_v51 = vpop.f32.mrb[85].mxu1 }
 0x54e   :  { %v1706_v53 = vadd.f32 %v1705_v51, %v3175_v46  ;;  %v1707_v32 = vpop.f32.mrb[86].mxu1  ;;  %1921 = vmatprep.subr.bf16.mxu0 %v1897_v9 }
 0x54f   :  { %v1708_v31 = vadd.f32 %v1707_v32, %v3177_v35  ;;  %v1709_v48 = vpop.f32.mrb[87].mxu1  ;;  %1922 = vmatpush1.bf16.msra.mxu0 %v1896_v14  ;;  %v1863_v21 = vmax.f32 %v1704_v1, 0.0 }
 0x550   :  { %v1710_v39 = vadd.f32 %v1709_v48, %v3177_v35  ;;  %v1864_v12 = vmax.f32 %v1706_v53, 0.0 }
 0x551   :  { %v1866_v60 = vmax.f32 %v1708_v31, 0.0 }
 0x552   :  { %v1867_v61 = vmax.f32 %v1710_v39, 0.0 }
 0x553   :  { %v1899_v40 = vpack.c.bf16 %v1866_v60, %v1863_v21 }
 0x554   :  { %v1900_v8 = vpack.c.bf16 %v1867_v61, %v1864_v12  ;;  %v1713_v45 = vpop.f32.mrb[88].mxu1 }
 0x555   :  { %v1714_v27 = vadd.f32 %v1713_v45, %v3181_v33  ;;  %v1715_v15 = vpop.f32.mrb[89].mxu1 }
 0x556   :  { %v1716_v46 = vadd.f32 %v1715_v15, %v3181_v33  ;;  %v1717_v3 = vpop.f32.mrb[90].mxu1  ;;  %1923 = vmatprep.subr.bf16.mxu0 %v1900_v8 }
 0x557   :  { %v1718_v20 = vadd.f32 %v1717_v3, %v3186_v50  ;;  %v1719_v62 = vpop.f32.mrb[91].mxu1  ;;  %1924 = vmatpush1.bf16.msra.mxu0 %v1899_v40  ;;  %v1869_v41 = vmax.f32 %v1714_v27, 0.0 }
 0x558   :  { %v1720_v35 = vadd.f32 %v1719_v62, %v3186_v50  ;;  %v1870_v4 = vmax.f32 %v1716_v46, 0.0 }
 0x559   :  { %v1872_v55 = vmax.f32 %v1718_v20, 0.0 }
 0x55a   :  { %v1873_v54 = vmax.f32 %v1720_v35, 0.0 }
 0x55b   :  { %v1902_v42 = vpack.c.bf16 %v1872_v55, %v1869_v41 }
 0x55c   :  { %v1903_v13 = vpack.c.bf16 %v1873_v54, %v1870_v4  ;;  %v1723_v19 = vpop.f32.mrb[92].mxu1 }
 0x55d   :  { %v1724_v63 = vadd.f32 %v1723_v19, %v3189_v17  ;;  %v1725_v28 = vpop.f32.mrb[93].mxu1  ;;  %v1913_v26 = vpop.permute.xlu0 %1912 }
 0x55e   :  { %v1726_v33 = vadd.f32 %v1725_v28, %v3189_v17  ;;  %v1727_v52 = vpop.f32.mrb[94].mxu1  ;;  %1925 = vmatprep.subr.bf16.mxu0 %v1903_v13 }
 0x55f   :  { %v1728_v36 = vadd.f32 %v1727_v52, %v3193_v47  ;;  %v1729_v34 = vpop.f32.mrb[95].mxu1  ;;  %1926 = vmatpush1.bf16.msra.mxu0 %v1902_v42  ;;  %v1875_v23 = vmax.f32 %v1724_v63, 0.0 }
 0x560   :  { %v1730_v50 = vadd.f32 %v1729_v34, %v3193_v47  ;;  %v1876_v43 = vmax.f32 %v1726_v33, 0.0 }
 0x561   :  { %v1878_v59 = vmax.f32 %v1728_v36, 0.0 }
 0x562   :  { %v1879_v44 = vmax.f32 %v1730_v50, 0.0 }
 0x563   :  { %v1905_v18 = vpack.c.bf16 %v1878_v59, %v1875_v23 }
 0x564   :  { %v1906_v0 = vpack.c.bf16 %v1879_v44, %v1876_v43  ;;  %v1733_v5 = vpop.f32.mrb[96].mxu1 }
 0x565   :  { %v1734_v2 = vadd.f32 %v1733_v5, %v3198_v56  ;;  %v1735_v10 = vpop.f32.mrb[97].mxu1 }
 0x566   :  { %v1736_v17 = vadd.f32 %v1735_v10, %v3198_v56  ;;  %v1737_v58 = vpop.f32.mrb[98].mxu1  ;;  %1927 = vmatprep.subr.bf16.mxu0 %v1906_v0 }
 0x567   :  { %v1738_v38 = vadd.f32 %v1737_v58, %v3201_v37  ;;  %v1739_v49 = vpop.f32.mrb[99].mxu1  ;;  %1928 = vmatpush1.bf16.msra.mxu0 %v1905_v18  ;;  %v1881_v11 = vmax.f32 %v1734_v2, 0.0 }
 0x568   :  { %v1740_v47 = vadd.f32 %v1739_v49, %v3201_v37  ;;  %v1882_v57 = vmax.f32 %v1736_v17, 0.0 }
 0x569   :  { %v1884_v7 = vmax.f32 %v1738_v38, 0.0 }
 0x56a   :  { %v1885_v25 = vmax.f32 %v1740_v47, 0.0 }
 0x56b   :  { %v1908_v24 = vpack.c.bf16 %v1884_v7, %v1881_v11 }
 0x56c   :  { %v1909_v6 = vpack.c.bf16 %v1885_v25, %v1882_v57 }
 0x56e   :  { %1929 = vmatprep.subr.bf16.mxu0 %v1909_v6 }
 0x56f   :  { %1930 = vmatpush1.bf16.msra.mxu0 %v1908_v24 }
 0x572   :  { %1948 = vmatmul.mubr.bf16.vlgmr.msra.gmra.mrb[100].mxu0 %v3214_v16 }
 0x5d0   :  { %v1990_v56 = vpop.f32.mrb[100].mxu1 }
 0x5d1   :  { %v2281_v22 = vpop.f32.mrb[101].mxu1  ;;  %v1991_v30 = vadd.f32 %v1990_v56, %v1913_v26 }
 0x5d2   :  { %v1993_v14 = vpop.f32.mrb[102].mxu1 }
 0x5d3   :  { %2001 = vst [vmem:[%s3265_s6 + $0x28] sm:$0xff] %v1991_v30  ;;  %v2282_v37 = vpop.f32.mrb[103].mxu1 }
 0x645   :  { %v1949_v9 = vpop.f32.mrb[100].mxu0 }
 0x646   :  { %v1951_v29 = vpop.f32.mrb[101].mxu0  ;;  %v1950_v1 = vadd.f32 %v1949_v9, %v1913_v26 }
 0x647   :  { %v1953_v51 = vpop.f32.mrb[102].mxu0  ;;  %v1952_v53 = vadd.f32 %v1951_v29, %v1913_v26 }
 0x648   :  { %1999 = vst [vmem:[%s3265_s6 + $0x18] sm:$0xff] %v1950_v1  ;;  %v1954_v16 = vpop.f32.mrb[103].mxu0 }
 0x649   :  { %2000 = vst [vmem:[%s3265_s6 + $0x20] sm:$0xff] %v1952_v53 }

</bundles_post_ra>
